<compile_context>
chip_gen: v5e
topology: v5e:2x2
jax: 0.10.0
libtpu: 0.0.40
codegen_flags: <defaults>
</compile_context>

<pallas_src>
import math

import jax
import jax.numpy as jnp
from jax.experimental import pallas as pl
from jax.experimental.pallas import tpu as pltpu

_LANE = 128
_INV_SQRT2 = 0.7071067811865476


def _round_up(x, m):
    return ((x + m - 1) // m) * m


def _vmem_budget_and_cores():
    """(usable VMEM budget in bytes, two-TensorCore hint) for this chip."""
    phys = None
    try:
        info = pltpu.get_tpu_info()
        phys = int(getattr(info, "vmem_capacity_bytes", 0)) or None
    except Exception:
        phys = None
    if phys is None:
        # Conservative fallback: assume the smallest (v7x-sized) VMEM.
        phys = 64 << 20
    if phys <= (64 << 20):
        # v7x-class: 64 MiB per TensorCore, 2 TCs/chip -> leave headroom for
        # Mosaic internal scratch / semaphores.
        return min(phys - (12 << 20), 52 << 20), True
    # v5e/v6e-class: 128 MiB, single TensorCore -> use most of it.
    return min(phys - (24 << 20), 104 << 20), False


def _select_tiles(n_rows, cin_p, hid_p, cout_p, mxu_bytes, out_bytes,
                  vmem_budget, use_scratch_acc,
                  row_tile_req=None, hidden_tile_req=None):
    """Pick (row_tile, hidden_tile, tile_bytes) that fit the VMEM budget."""
    n16 = _round_up(max(int(n_rows), 1), 16)

    # 256-aligned row tiles for the 256-tall MXU (v6e/v7x; also fine on v5e),
    # 16-aligned fallbacks for short inputs (bf16 packs 2 rows per sublane).
    row_cands = [c for c in (1024, 768, 512, 256, 128, 64, 32, 16) if c <= n16]
    if n16 < 1024 and n16 not in row_cands:
        row_cands.append(n16)
    if not row_cands:
        row_cands = [16]
    row_cands = sorted(set(row_cands), reverse=True)

    # Hidden tiles must divide the (lane-padded) hidden dim exactly, since the
    # weights are pre-padded once outside the call path.
    hid_cands = [c for c in (2048, 1024, 512, 256, 128)
                 if c <= hid_p and hid_p % c == 0]
    if hid_p <= 4096 and hid_p not in hid_cands:
        hid_cands.append(hid_p)
    hid_cands = sorted(set(hid_cands), reverse=True)

    if row_tile_req is not None:
        rt_req = max(16, _round_up(min(int(row_tile_req), n16), 16))
        row_cands = [rt_req]
    if hidden_tile_req is not None:
        fit = [c for c in hid_cands if c <= int(hidden_tile_req)]
        hid_cands = [max(fit)] if fit else [min(hid_cands)]

    def usage(rt, ht):
        blk = (rt * cin_p * mxu_bytes          # x tile
               + cin_p * ht * mxu_bytes        # w1 tile
               + 8 * ht * 4                    # b1 tile (sublane-padded, f32)
               + ht * cout_p * mxu_bytes       # w2 tile
               + 8 * cout_p * 4                # b2 tile (sublane-padded, f32)
               + rt * cout_p * out_bytes)      # output tile
        total = 2 * blk                        # double-buffered pipeline blocks
        if use_scratch_acc:
            total += rt * cout_p * 4           # resident f32 accumulator
        return total

    # Prefer the largest row tile (amortizes weight re-streaming), then the
    # largest hidden tile (fewer accumulator RMW passes). Require a reasonable
    # hidden tile first; only drop that floor if nothing fits.
    ht_floor = min(512, max(hid_cands))
    for require_floor in (True, False):
        for rt in row_cands:
            for ht in hid_cands:
                if require_floor and ht < ht_floor:
                    continue
                if usage(rt, ht) <= vmem_budget:
                    return rt, ht, usage(rt, ht)
    rt, ht = row_cands[-1], hid_cands[-1]
    return rt, ht, usage(rt, ht)


def _gelu_exact_f32(pre):
    # Exact erf-form GELU (PyTorch nn.GELU default), f32 epilogue.
    return 0.5 * pre * (1.0 + jax.lax.erf(pre * _INV_SQRT2))


def _mlp_kernel_f32_out(x_ref, w1_ref, b1_ref, w2_ref, b2_ref, o_ref):
    """float32 output: accumulate fc2 partials directly into the resident
    output block (no separate scratch accumulator)."""
    h = pl.program_id(1)

    @pl.when(h == 0)
    def _init():
        o_ref[...] = jnp.zeros_like(o_ref)

    pre = jnp.dot(x_ref[...], w1_ref[...],
                  preferred_element_type=jnp.float32) + b1_ref[...]
    act = _gelu_exact_f32(pre)
    # dropout(p=0.0) == identity -> elided
    # Single fused `+= dot(...)` so v7x can use MRB in-place accumulation.
    o_ref[...] += jnp.dot(act.astype(w2_ref.dtype), w2_ref[...],
                          preferred_element_type=jnp.float32)

    @pl.when(h == pl.num_programs(1) - 1)
    def _finalize():
        o_ref[...] += b2_ref[...]


def _mlp_kernel_acc(x_ref, w1_ref, b1_ref, w2_ref, b2_ref, o_ref, acc_ref):
    """Narrow output dtype: f32 VMEM scratch accumulator, cast on finalize."""
    h = pl.program_id(1)

    @pl.when(h == 0)
    def _init():
        acc_ref[...] = jnp.zeros_like(acc_ref)

    pre = jnp.dot(x_ref[...], w1_ref[...],
                  preferred_element_type=jnp.float32) + b1_ref[...]
    act = _gelu_exact_f32(pre)
    # dropout(p=0.0) == identity -> elided
    acc_ref[...] += jnp.dot(act.astype(w2_ref.dtype), w2_ref[...],
                            preferred_element_type=jnp.float32)

    @pl.when(h == pl.num_programs(1) - 1)
    def _finalize():
        o_ref[...] = (acc_ref[...] + b2_ref[...]).astype(o_ref.dtype)


def prepare_mlp_params(w1, b1, w2, b2, *, mxu_dtype=jnp.bfloat16):
    """Pad feature axes to lane multiples and cast MXU operands ONCE.

    Hoisted out of the per-call path: the padded bf16 weight copies are built a
    single time instead of re-materialising full weight copies in HBM on every
    forward call. Zero padding is exact (padded rows/cols contribute 0).
    """
    cin, hidden = w1.shape
    cout = w2.shape[1]
    cin_p = _round_up(cin, _LANE)
    hid_p = _round_up(hidden, _LANE)
    cout_p = _round_up(cout, _LANE)
    w1_p = jnp.pad(w1, ((0, cin_p - cin), (0, hid_p - hidden))).astype(mxu_dtype)
    b1_p = jnp.pad(b1, (0, hid_p - hidden)).reshape(1, hid_p).astype(jnp.float32)
    w2_p = jnp.pad(w2, ((0, hid_p - hidden), (0, cout_p - cout))).astype(mxu_dtype)
    b2_p = jnp.pad(b2, (0, cout_p - cout)).reshape(1, cout_p).astype(jnp.float32)
    return {"w1": w1_p, "b1": b1_p, "w2": w2_p, "b2": b2_p,
            "cin": cin, "hidden": hidden, "cout": cout,
            "mxu_dtype": mxu_dtype}


def mlp_pallas(x, params, *, row_tile=None, hidden_tile=None):
    """x: [..., in_features] -> [..., out_features] (fc1 -> GELU -> fc2)."""
    w1_p, b1_p = params["w1"], params["b1"]
    w2_p, b2_p = params["w2"], params["b2"]
    cin, cout = params["cin"], params["cout"]
    mxu_dtype = params["mxu_dtype"]
    cin_p, hid_p = w1_p.shape
    cout_p = w2_p.shape[1]

    orig_shape = x.shape
    assert orig_shape[-1] == cin, "feature-dim mismatch"
    x2d = x.reshape(-1, cin)
    n = x2d.shape[0]
    out_dtype = x.dtype

    # f32 output -> accumulate directly into the resident output block;
    # narrower output dtypes keep a separate f32 scratch accumulator.
    use_scratch_acc = out_dtype != jnp.float32

    mxu_bytes = jnp.dtype(mxu_dtype).itemsize
    out_bytes = jnp.dtype(out_dtype).itemsize

    vmem_budget, two_core = _vmem_budget_and_cores()
    rt, ht, tile_bytes = _select_tiles(
        n, cin_p, hid_p, cout_p, mxu_bytes, out_bytes, vmem_budget,
        use_scratch_acc, row_tile, hidden_tile)

    # On two-TensorCore parts the "parallel" row axis is the only way to use
    # the second core: keep the row grid at least 2 wide when rows allow it.
    n16 = _round_up(max(n, 1), 16)
    if two_core and row_tile is None and (-(-n16 // rt)) < 2 and rt >= 32:
        rt = _round_up(-(-rt // 2), 16)

    n_p = _round_up(max(n, 1), rt)
    x_p = jnp.pad(x2d, ((0, n_p - n), (0, cin_p - cin))).astype(mxu_dtype)

    grid = (n_p // rt, hid_p // ht)

    # Exact tile budget + a small fixed margin for Mosaic internals,
    # capped at the generation-aware ceiling.
    vmem_limit = int(min(vmem_budget, max(tile_bytes + (4 << 20), 16 << 20)))

    kernel = _mlp_kernel_acc if use_scratch_acc else _mlp_kernel_f32_out
    scratch = ([pltpu.VMEM((rt, cout_p), jnp.float32)]
               if use_scratch_acc else [])

    out2d = pl.pallas_call(
        kernel,
        out_shape=jax.ShapeDtypeStruct((n_p, cout_p), out_dtype),
        grid_spec=pltpu.PrefetchScalarGridSpec(
            num_scalar_prefetch=0,
            grid=grid,
            in_specs=[
                pl.BlockSpec((rt, cin_p), lambda i, h: (i, 0)),     # x
                pl.BlockSpec((cin_p, ht), lambda i, h: (0, h)),     # w1
                pl.BlockSpec((1, ht), lambda i, h: (0, h)),         # b1
                pl.BlockSpec((ht, cout_p), lambda i, h: (h, 0)),    # w2
                pl.BlockSpec((1, cout_p), lambda i, h: (0, 0)),     # b2
            ],
            out_specs=pl.BlockSpec((rt, cout_p), lambda i, h: (i, 0)),
            scratch_shapes=scratch,
        ),
        compiler_params=pltpu.CompilerParams(
            # NOTE: the hidden (reduction) axis MUST stay the last,
            # "arbitrary" grid axis; reordering it or marking it "parallel"
            # silently corrupts the resident accumulation.
            dimension_semantics=("parallel", "arbitrary"),
            vmem_limit_bytes=vmem_limit,
        ),
    )(x_p, w1_p, b1_p, w2_p, b2_p)

    return out2d[:n, :cout].reshape(*orig_shape[:-1], cout)


def mlp_forward(x, w1, b1, w2, b2, *, mxu_dtype=jnp.bfloat16):
    """Convenience wrapper (prefer caching prepare_mlp_params() yourself)."""
    return mlp_pallas(x, prepare_mlp_params(w1, b1, w2, b2, mxu_dtype=mxu_dtype))


def init_mlp_params(key, in_features, hidden_features, out_features,
                    dtype=jnp.float32):
    """Deterministic init mimicking nn.Linear default (uniform +/- 1/sqrt(fan_in))."""
    k1, k2, k3, k4 = jax.random.split(key, 4)
    bound1 = 1.0 / math.sqrt(in_features)
    bound2 = 1.0 / math.sqrt(hidden_features)
    w1 = jax.random.uniform(k1, (in_features, hidden_features), dtype,
                            minval=-bound1, maxval=bound1)
    b1 = jax.random.uniform(k2, (hidden_features,), dtype,
                            minval=-bound1, maxval=bound1)
    w2 = jax.random.uniform(k3, (hidden_features, out_features), dtype,
                            minval=-bound2, maxval=bound2)
    b2 = jax.random.uniform(k4, (out_features,), dtype,
                            minval=-bound2, maxval=bound2)
    return w1, b1, w2, b2


# TODO(synk): training-mode dropout (p > 0) would need the pltpu PRNG path
# (pltpu.prng_seed / prng_random_bits); p = 0.0 (module default / eval) is the
# identity and is elided here.

if __name__ == "__main__":
    key = jax.random.PRNGKey(0)
    kx, kp = jax.random.split(key)

    # Small shapes exercising ragged rows (192), multi-128 hidden dim, and
    # lane padding of in/out features (64 -> 128).
    B, S = 2, 96
    in_features, hidden_features, out_features = 64, 256, 64

    x = jax.random.normal(kx, (B, S, in_features), dtype=jnp.float32)
    w1, b1, w2, b2 = init_mlp_params(kp, in_features, hidden_features,
                                     out_features)

    # Weight pad + bf16 cast hoisted out of the per-call path (done once).
    params = prepare_mlp_params(w1, b1, w2, b2)

    out = mlp_pallas(x, params)
    out = jax.block_until_ready(out)

    # Reference in plain JAX (f32, exact-erf GELU). Kernel uses bf16 MXU
    # operands with f32 accumulation -> bf16-appropriate tolerance.
    h_ref = x @ w1 + b1
    h_ref = 0.5 * h_ref * (1.0 + jax.lax.erf(h_ref / math.sqrt(2.0)))
    ref = h_ref @ w2 + b2

    assert out.shape == (B, S, out_features)
    err = float(jnp.max(jnp.abs(out - ref)))
    assert err < 3e-2, f"f32-out mismatch vs reference: max abs err {err}"

    # Also exercise the scratch-accumulator path (narrow output dtype).
    out_bf16 = mlp_pallas(x.astype(jnp.bfloat16), params)
    out_bf16 = jax.block_until_ready(out_bf16)
    err_bf16 = float(jnp.max(jnp.abs(out_bf16.astype(jnp.float32) - ref)))
    assert err_bf16 < 8e-2, f"bf16-out mismatch vs reference: max abs err {err_bf16}"

    print("KERNEL_OK")
</pallas_src>

<mosaic_0001>
module attributes {stable_mosaic.version = 11 : i64} {
  func.func @_mlp_kernel_f32_out(%arg0: i32, %arg1: i32, %arg2: memref<96x128xbf16, #tpu.memory_space<vmem>>, %arg3: memref<128x256xbf16, #tpu.memory_space<vmem>>, %arg4: memref<1x256xf32, #tpu.memory_space<vmem>>, %arg5: memref<256x128xbf16, #tpu.memory_space<vmem>>, %arg6: memref<1x128xf32, #tpu.memory_space<vmem>>, %arg7: memref<96x128xf32, #tpu.memory_space<vmem>>) attributes {dimension_semantics = [#tpu.dimension_semantics<parallel>, #tpu.dimension_semantics<arbitrary>], iteration_bounds = array<i64: 2, 1>, scalar_prefetch = 0 : i64, scratch_operands = 0 : i64, tpu.core_type = #tpu.core_type<tc>, window_params = [{transform_indices = @transform_0, window_bounds = array<i64: 96, 128>}, {transform_indices = @transform_1, window_bounds = array<i64: 128, 256>}, {transform_indices = @transform_2, window_bounds = array<i64: 1, 256>}, {transform_indices = @transform_3, window_bounds = array<i64: 256, 128>}, {pipeline_mode = #tpu.pipeline_mode<synchronous>, transform_indices = @transform_4, window_bounds = array<i64: 1, 128>}, {transform_indices = @transform_5, window_bounds = array<i64: 96, 128>}]} {
    %c0_i32 = arith.constant 0 : i32
    %0 = arith.cmpi eq, %arg1, %c0_i32 : i32
    %1 = arith.extui %0 : i1 to i32
    %c0_i32_0 = arith.constant 0 : i32
    %2 = arith.cmpi ne, %1, %c0_i32_0 : i32
    scf.if %2 {
      %cst_18 = arith.constant 0.000000e+00 : f32
      %26 = vector.broadcast %cst_18 : f32 to vector<96x128xf32>
      %c0_19 = arith.constant 0 : index
      %c0_20 = arith.constant 0 : index
      %27 = vector.load %arg7[%c0_19, %c0_20] : memref<96x128xf32, #tpu.memory_space<vmem>>, vector<96x128xf32>
      tpu.vector_store %arg7[%c0_19, %c0_20], %26 {strides = array<i32>} : memref<96x128xf32, #tpu.memory_space<vmem>>, vector<96x128xf32>,
    } else {
    }
    %c0 = arith.constant 0 : index
    %c0_1 = arith.constant 0 : index
    %3 = vector.load %arg2[%c0, %c0_1] : memref<96x128xbf16, #tpu.memory_space<vmem>>, vector<96x128xbf16>
    %c0_2 = arith.constant 0 : index
    %c0_3 = arith.constant 0 : index
    %4 = vector.load %arg3[%c0_2, %c0_3] : memref<128x256xbf16, #tpu.memory_space<vmem>>, vector<128x256xbf16>
    %cst = arith.constant dense<0.000000e+00> : vector<96x256xf32>
    %5 = tpu.matmul %3, %4, %cst {dimension_numbers = #tpu.dot_dimension_numbers<[1], [0], [0], [1], [0, 0, 1, 1], [], []>} : vector<96x128xbf16>, vector<128x256xbf16>, vector<96x256xf32> -> vector<96x256xf32>
    %c0_4 = arith.constant 0 : index
    %c0_5 = arith.constant 0 : index
    %6 = vector.load %arg4[%c0_4, %c0_5] : memref<1x256xf32, #tpu.memory_space<vmem>>, vector<1x256xf32>
    %7 = vector.broadcast %6 : vector<1x256xf32> to vector<96x256xf32>
    %8 = arith.addf %5, %7 : vector<96x256xf32>
    %cst_6 = arith.constant 5.000000e-01 : f32
    %9 = vector.broadcast %cst_6 : f32 to vector<96x256xf32>
    %10 = arith.mulf %9, %8 : vector<96x256xf32>
    %cst_7 = arith.constant 0.707106769 : f32
    %11 = vector.broadcast %cst_7 : f32 to vector<96x256xf32>
    %12 = arith.mulf %8, %11 : vector<96x256xf32>
    %13 = math.erf %12 : vector<96x256xf32>
    %cst_8 = arith.constant 1.000000e+00 : f32
    %14 = vector.broadcast %cst_8 : f32 to vector<96x256xf32>
    %15 = arith.addf %14, %13 : vector<96x256xf32>
    %16 = arith.mulf %10, %15 : vector<96x256xf32>
    %c0_9 = arith.constant 0 : index
    %c0_10 = arith.constant 0 : index
    %17 = vector.load %arg7[%c0_9, %c0_10] : memref<96x128xf32, #tpu.memory_space<vmem>>, vector<96x128xf32>
    %18 = arith.truncf %16 : vector<96x256xf32> to vector<96x256xbf16>
    %c0_11 = arith.constant 0 : index
    %c0_12 = arith.constant 0 : index
    %19 = vector.load %arg5[%c0_11, %c0_12] : memref<256x128xbf16, #tpu.memory_space<vmem>>, vector<256x128xbf16>
    %cst_13 = arith.constant dense<0.000000e+00> : vector<96x128xf32>
    %20 = tpu.matmul %18, %19, %cst_13 {dimension_numbers = #tpu.dot_dimension_numbers<[1], [0], [0], [1], [0, 0, 1, 1], [], []>} : vector<96x256xbf16>, vector<256x128xbf16>, vector<96x128xf32> -> vector<96x128xf32>
    %21 = arith.addf %17, %20 : vector<96x128xf32>
    %c0_14 = arith.constant 0 : index
    %c0_15 = arith.constant 0 : index
    %22 = vector.load %arg7[%c0_14, %c0_15] : memref<96x128xf32, #tpu.memory_space<vmem>>, vector<96x128xf32>
    tpu.vector_store %arg7[%c0_14, %c0_15], %21 {strides = array<i32>} : memref<96x128xf32, #tpu.memory_space<vmem>>, vector<96x128xf32>,
    %c0_i32_16 = arith.constant 0 : i32
    %23 = arith.cmpi eq, %arg1, %c0_i32_16 : i32
    %24 = arith.extui %23 : i1 to i32
    %c0_i32_17 = arith.constant 0 : i32
    %25 = arith.cmpi ne, %24, %c0_i32_17 : i32
    scf.if %25 {
      %c0_18 = arith.constant 0 : index
      %c0_19 = arith.constant 0 : index
      %26 = vector.load %arg7[%c0_18, %c0_19] : memref<96x128xf32, #tpu.memory_space<vmem>>, vector<96x128xf32>
      %c0_20 = arith.constant 0 : index
      %c0_21 = arith.constant 0 : index
      %27 = vector.load %arg6[%c0_20, %c0_21] : memref<1x128xf32, #tpu.memory_space<vmem>>, vector<1x128xf32>
      %28 = vector.broadcast %27 : vector<1x128xf32> to vector<96x128xf32>
      %29 = arith.addf %26, %28 : vector<96x128xf32>
      %c0_22 = arith.constant 0 : index
      %c0_23 = arith.constant 0 : index
      %30 = vector.load %arg7[%c0_22, %c0_23] : memref<96x128xf32, #tpu.memory_space<vmem>>, vector<96x128xf32>
      tpu.vector_store %arg7[%c0_22, %c0_23], %29 {strides = array<i32>} : memref<96x128xf32, #tpu.memory_space<vmem>>, vector<96x128xf32>,
    } else {
    }
    return
  }
  func.func @transform_0(%arg0: i32, %arg1: i32) -> (i32, i32) {
    %c0_i32 = arith.constant 0 : i32
    %c0_i32_0 = arith.constant 0 : i32
    return %arg0, %c0_i32 : i32, i32
  }
  func.func @transform_1(%arg0: i32, %arg1: i32) -> (i32, i32) {
    %c0_i32 = arith.constant 0 : i32
    %c0_i32_0 = arith.constant 0 : i32
    return %c0_i32, %arg1 : i32, i32
  }
  func.func @transform_2(%arg0: i32, %arg1: i32) -> (i32, i32) {
    %c0_i32 = arith.constant 0 : i32
    %c0_i32_0 = arith.constant 0 : i32
    return %c0_i32, %arg1 : i32, i32
  }
  func.func @transform_3(%arg0: i32, %arg1: i32) -> (i32, i32) {
    %c0_i32 = arith.constant 0 : i32
    %c0_i32_0 = arith.constant 0 : i32
    return %arg1, %c0_i32 : i32, i32
  }
  func.func @transform_4(%arg0: i32, %arg1: i32) -> (i32, i32) {
    %c0_i32 = arith.constant 0 : i32
    %c0_i32_0 = arith.constant 0 : i32
    %c0_i32_1 = arith.constant 0 : i32
    return %c0_i32, %c0_i32_0 : i32, i32
  }
  func.func @transform_5(%arg0: i32, %arg1: i32) -> (i32, i32) {
    %c0_i32 = arith.constant 0 : i32
    %c0_i32_0 = arith.constant 0 : i32
    return %arg0, %c0_i32 : i32, i32
  }
}

</mosaic_0001>

<bundles_post_ra>
// kernel: tpu_custom_call.1
= control target key start
LH: loop header
LB: loop body
LE: loop exit
PB: predicated region body
PF: predicated region fallthrough
CT: control target
= control target key end

     0   :  { %s3902_s0 = inlined_call_operand.hbm [shape: bf16[192,128], index: 0, kind: input, shape index: {}]   ;;  %s3903_s1 = inlined_call_operand.hbm [shape: bf16[128,256], index: 1, kind: input, shape index: {}]   ;;  %s3904_s2 = inlined_call_operand.hbm [shape: f32[1,256], index: 2, kind: input, shape index: {}]   ;;  %s3905_s3 = inlined_call_operand.hbm [shape: bf16[256,128], index: 3, kind: input, shape index: {}]   ;;  %s3906_s4 = inlined_call_operand.vmem [shape: f32[1,128], index: 4, kind: input, shape index: {}]   ;;  %s3907_s5 = inlined_call_operand.hbm [shape: f32[192,128], index: 5, kind: output, shape index: {}]  }
   0x1   :  { %3921 = sst [smem:[#allocation43_spill]] %s3903_s1 }
   0x2   :  { %3922 = sst [smem:[#allocation44_spill]] %s3904_s2 }
   0x3   :  { %10 = vsyncpa [#allocation3], 0 }
   0x4   :  { %12 = vsyncpa [#allocation3 + $0x1], 0 }
   0x5   :  { %13 = vsyncpa [#allocation6], 0 }
   0x6   :  { %14 = vsyncpa [#allocation9], 0 }
   0x7   :  { %15 = vsyncpa [#allocation4], 0 }
   0x8   :  { %17 = vsyncpa [#allocation4 + $0x1], 0  ;;  %s2696_s18 = smov 0   ;;  %s2698_s19 = smov 0  }
   0x9   :  { %s2700_s20 = smov 0   ;;  %s2702_s21 = smov 0  }
   0xa   :  { %s2704_s22 = smov 0   ;;  %s2706_s23 = smov 0  }
   0xb LB: > { %s2062_s24 = sadd.s32 4294967295, %s2655_s23   ;;  %s2063_s25 = sadd.s32 4294967294, %s2655_s23   ;;  %s2655_s23 = sphi %s2706_s23, %s23_s23   ;;  %s2651_s22 = sphi %s2704_s22, %s4020_s22   ;;  %s2647_s21 = sphi %s2702_s21, %s4019_s21   ;;  %s2643_s20 = sphi %s2700_s20, %s4018_s20   ;;  %s2639_s19 = sphi %s2698_s19, %s4017_s19   ;;  %s2635_s18 = sphi %s2696_s18, %s4016_s18  }
   0xc   : > { %p55_p0 = scmp.ne.s32.totalorder %s2639_s19, %s2635_s18  ;;  %p2730_p1 = scmp.eq.s32.totalorder %s2062_s24, 0 }
   0xd   : > { %p2734_p2 = scmp.eq.s32.totalorder %s2062_s24, 1  ;;  %p184_p3 = scmp.eq.s32.totalorder %s2063_s25, 1 }
   0xe   : > { %p2740_p4 = por %p2730_p1, %p55_p0  ;;  %p2064_p5 = scmp.ge.s32.totalorder %s2655_s23, 1 }
   0xf   : > { %p2745_p6 = por %p184_p3, %p55_p0  ;;  %p191_p7 = scmp.lt.s32.totalorder %s2655_s23, 3 }
  0x10   : > { %s3927_s1 = sld [smem:[#allocation43_spill]]  ;;  %s2657_s9 = smov [#allocation5]  }
  0x11   : > { %p2753_p8 = pnand %p2064_p5, %p191_p7  ;;  %s207_s10 = sshll.u32 %s2657_s9, 4  ;;  %s208_s10 = int_to_ptr.vmem [resolvable:$true] %s207_s10 }
  0x12   : > { %p2068_p11 = scmp.ge.s32.totalorder %s2655_s23, 2  ;;  %s3930_s2 = sld [smem:[#allocation44_spill]] }
  0x13   : > { %p2312_p9 = pneg %p2753_p8  ;;  %s2658_s15 = smov 128  }
  0x14   : > { %s2659_s16 = smov 8   ;;  %s2660_s17 = smov [#allocation7]  }
  0x15   : > { %p2761_p10 = pnand %p2312_p9, %p2730_p1  ;;  %s224_s24 = sshll.u32 %s2660_s17, 4  ;;  %s225_s24 = int_to_ptr.vmem [resolvable:$true] %s224_s24 }
  0x16   : > { %s205_s7 = sshll.u32 %s3927_s1, 4  ;;  %s236_s6 = sshll.u32 %s3905_s3, 4  ;;  %s206_s7 = int_to_ptr.hbm [resolvable:$true] %s205_s7  ;;  %s237_s6 = int_to_ptr.hbm [resolvable:$true] %s236_s6 }
  0x17   : > { %2315 = dma.hbm_to_vmem [thread:$0]  (!%p2761_p10), %s206_s7, 2048, %s208_s10, [#allocation6], %s2658_s15, %s2658_s15, %s2659_s16  }
  0x18   : > { %s222_s14 = sshll.u32 %s3930_s2, 4  ;;  %s2661_s9 = smov [#allocation8]   ;;  %s223_s14 = int_to_ptr.hbm [resolvable:$true] %s222_s14 }
  0x19   : > { %2318 = dma.hbm_to_vmem [thread:$0]  (!%p2761_p10), %s223_s14, 32, %s225_s24, [#allocation6]  }
  0x1a   : > { %s238_s12 = sshll.u32 %s2661_s9, 4  ;;  %s3908_s13 = smov 64   ;;  %s239_s12 = int_to_ptr.vmem [resolvable:$true] %s238_s12 }
  0x1b   : > { %s3909_s7 = smov 4   ;;  %s42_s10 = sadd.s32 1, %s2643_s20 }
  0x1c   : > { %2321 = dma.hbm_to_vmem [thread:$0]  (!%p2761_p10), %s237_s6, 2048, %s239_s12, [#allocation9], %s3908_s13, %s3908_s13, %s3909_s7  }
  0x1d   : > { %s35_s15 = sadd.s32 1, %s2651_s22  ;;  %p49_p12 = scmp.ne.s32.totalorder %s2643_s20, %s2639_s19 }
  0x1e   : > { %p37_p13 = scmp.ge.s32.totalorder %s35_s15, 2  ;;  %p50_p0 = scmp.eq.s32.totalorder %s2655_s23, 0 }
  0x1f   : > { %p2788_p3 = por %p2734_p2, %p49_p12  ;;  %p2333_p5 = scmp.lt.s32.totalorder %s2655_s23, 2 }
  0x20   : > { %s4022_s15 = smov (%p37_p13, %s35_s15), 0  ;;  %p51_p7 = por %p50_p0, %p49_p12 }
  0x21   : > { %s255_s11 = sand.u32 1, %s2643_s20   ;;  %s39_s16 = ssub.s32 %s2651_s22, %s4022_s15 }
  0x22   : > { %p40_p9 = scmp.eq.s32.totalorder %s39_s16, 0  ;;  %s2293_s17 = smul.u32 48, %s255_s11 }
  0x23   : > { %s2253_s24 = smul.u32 48, %s2651_s22  ;;  %p2323_p10 = pnand %p2333_p5, %p51_p7 }
  0x24   : > { %s2800_s25 = scalar_select %p40_p9, %s2643_s20, %s42_s10  }
  0x25   : > { %s264_s27 = scalar_lea.hbm %s3902_s0, %s2253_s24  ;;  %s259_s12 = scalar_lea.vmem [#allocation2], %s2293_s17 }
  0x26   : > { %s265_s9 = sshll.u32 %s264_s27, 4  ;;  %s267_s13 = sshll.u32 %s259_s12, 4  ;;  %s266_s9 = int_to_ptr.hbm [resolvable:$true] %s265_s9  ;;  %s268_s13 = int_to_ptr.vmem [resolvable:$true] %s267_s13 }
  0x27   : > { %s256_s7 = scalar_lea.sflag [#allocation3], %s255_s11  ;;  %s3932_s1 = smov 4  }
  0x28   : > { %s3933_s2 = smov 64   ;;  %279 = sbr.rel (%p2753_p8) target bundleno = 652 (0x28c), region = 40 }
  0x29   : > { %2325 = dma.hbm_to_vmem [thread:$0]  (!%p2323_p10), %s266_s9, 768, %s268_s13, %s256_s7, %s3933_s2, %s3933_s2, %s3932_s1  }
  0x2d   : > { %s2811_s10 = sand.u32 1, %s2639_s19  }
  0x2e   : > { %s2294_s16 = smul.u32 48, %s2811_s10  ;;  %s282_s24 = scalar_lea.sflag [#allocation3], %s2811_s10 }
  0x30   : > { %s2815_s17 = scalar_lea.vmem [#allocation2], %s2294_s16 }
  0x31   : > { %2618 = dma.done.wait (%p2740_p4), %s282_s24, 768  }
  0x32   : > { %2620 = vsyncadd (%p2740_p4), %s282_s24, 4294966528 }
  0x33   : > { %2622 = dma.done.wait (%p2730_p1), [#allocation6], 2080  }
  0x34   : > { %2624 = vsyncadd (%p2730_p1), [#allocation6], 4294965216 }
  0x35   : > { %2626 = dma.done.wait (%p2730_p1), [#allocation9], 2048  }
  0x36   : > { %2628 = vsyncadd (%p2730_p1), [#allocation9], 4294965248  ;;  %v2156_v0 = vld [vmem:[#allocation5 + $0x70] sm:$0xf]  ;;  %v2275_v1 = vld [vmem:[#allocation5 + $0x74] sm:$0xf0] }
  0x37   : > { %v2274_v2 = vld [vmem:[#allocation5 + $0x74] sm:$0xf]  ;;  %v2157_v3 = vor.u32 %v2275_v1, %v2156_v0  ;;  %v2158_v4 = vld [vmem:[#allocation5 + $0x78] sm:$0xf0]  ;;  %v2148_v5 = vld [vmem:[#allocation5 + $0x60] sm:$0xf] }
  0x38   : > { %v2273_v6 = vld [vmem:[#allocation5 + $0x64] sm:$0xf0]  ;;  %v2161_v7 = vor.u32 %v2274_v2, %v2158_v4  ;;  %v2272_v8 = vld [vmem:[#allocation5 + $0x64] sm:$0xf]  ;;  %v2150_v9 = vld [vmem:[#allocation5 + $0x68] sm:$0xf0] }
  0x39   : > { %499 = vmatpush.bf16.msra.mxu0 %v2157_v3  ;;  %v2149_v10 = vor.u32 %v2273_v6, %v2148_v5  ;;  %v2153_v11 = vor.u32 %v2272_v8, %v2150_v9  ;;  %v2140_v12 = vld [vmem:[#allocation5 + $0x50] sm:$0xf]  ;;  %v2271_v13 = vld [vmem:[#allocation5 + $0x54] sm:$0xf0]  ;;  %v2270_v14 = vld [vmem:[#allocation5 + $0x54] sm:$0xf] }
  0x3a   : > { %538 = vmatpush.bf16.msra.mxu1 %v2161_v7  ;;  %v2142_v15 = vld [vmem:[#allocation5 + $0x58] sm:$0xf0]  ;;  %v2141_v16 = vor.u32 %v2271_v13, %v2140_v12  ;;  %v2132_v18 = vld [vmem:[#allocation5 + $0x40] sm:$0xf]  ;;  %v2269_v19 = vld [vmem:[#allocation5 + $0x44] sm:$0xf0] }
  0x3b   : > { %v2145_v17 = vor.u32 %v2270_v14, %v2142_v15  ;;  %v2268_v20 = vld [vmem:[#allocation5 + $0x44] sm:$0xf]  ;;  %v2134_v21 = vld [vmem:[#allocation5 + $0x48] sm:$0xf0]  ;;  %v2133_v22 = vor.u32 %v2269_v19, %v2132_v18  ;;  %v2124_v24 = vld [vmem:[#allocation5 + $0x30] sm:$0xf] }
  0x3c   : > { %v2137_v23 = vor.u32 %v2268_v20, %v2134_v21  ;;  %v2267_v25 = vld [vmem:[#allocation5 + $0x34] sm:$0xf0]  ;;  %v2266_v26 = vld [vmem:[#allocation5 + $0x34] sm:$0xf]  ;;  %v2126_v27 = vld [vmem:[#allocation5 + $0x38] sm:$0xf0] }
  0x3d   : > { %500 = vmatpush.bf16.msra.mxu0 %v2149_v10  ;;  %v2125_v28 = vor.u32 %v2267_v25, %v2124_v24  ;;  %v2129_v29 = vor.u32 %v2266_v26, %v2126_v27  ;;  %v2116_v30 = vld [vmem:[#allocation5 + $0x20] sm:$0xf]  ;;  %v2265_v31 = vld [vmem:[#allocation5 + $0x24] sm:$0xf0]  ;;  %v2264_v32 = vld [vmem:[#allocation5 + $0x24] sm:$0xf] }
  0x3e   : > { %539 = vmatpush.bf16.msra.mxu1 %v2153_v11  ;;  %v2118_v33 = vld [vmem:[#allocation5 + $0x28] sm:$0xf0]  ;;  %v2117_v34 = vor.u32 %v2265_v31, %v2116_v30  ;;  %v2108_v36 = vld [vmem:[#allocation5 + $0x10] sm:$0xf]  ;;  %v2263_v37 = vld [vmem:[#allocation5 + $0x14] sm:$0xf0] }
  0x3f   : > { %v2121_v35 = vor.u32 %v2264_v32, %v2118_v33  ;;  %v2262_v38 = vld [vmem:[#allocation5 + $0x14] sm:$0xf]  ;;  %v2110_v39 = vld [vmem:[#allocation5 + $0x18] sm:$0xf0]  ;;  %v2109_v40 = vor.u32 %v2263_v37, %v2108_v36  ;;  %v2100_v42 = vld [vmem:[#allocation5] sm:$0xf] }
  0x40   : > { %v2113_v41 = vor.u32 %v2262_v38, %v2110_v39  ;;  %v2261_v43 = vld [vmem:[#allocation5 + $0x4] sm:$0xf0]  ;;  %v2260_v44 = vld [vmem:[#allocation5 + $0x4] sm:$0xf]  ;;  %v2102_v45 = vld [vmem:[#allocation5 + $0x8] sm:$0xf0] }
  0x41   : > { %501 = vmatpush.bf16.msra.mxu0 %v2141_v16  ;;  %v2101_v46 = vor.u32 %v2261_v43, %v2100_v42  ;;  %v2105_v47 = vor.u32 %v2260_v44, %v2102_v45  ;;  %v2254_v48 = vld [vmem:[%s2815_s17] sm:$0xff]  ;;  %v2255_v49 = vld [vmem:[%s2815_s17 + $0x8] sm:$0xff]  ;;  %v2256_v50 = vld [vmem:[%s2815_s17 + $0x10] sm:$0xff]  ;;  %s2295_s1 = smul.u32 96, %s2811_s10  ;;  %s1931_s27 = scalar_lea.sflag [#allocation4], %s2811_s10 }
  0x42   : > { %540 = vmatpush.bf16.msra.mxu1 %v2145_v17  ;;  %v2257_v51 = vld [vmem:[%s2815_s17 + $0x18] sm:$0xff]  ;;  %v2258_v52 = vld [vmem:[%s2815_s17 + $0x20] sm:$0xff]  ;;  %v2259_v53 = vld [vmem:[%s2815_s17 + $0x28] sm:$0xff]  ;;  %s2292_s8 = smul.u32 96, %s2647_s21  ;;  %s2585_s24 = scalar_lea.hbm %s3907_s5, 192 }
  0x43   : > { %v377_v54 = vld [vmem:[#allocation7] sm:$0x3]  ;;  %v2282_v4 = vld [vmem:[#allocation8 + $0x30] sm:$0xff]  ;;  %v2281_v15 = vld [vmem:[#allocation8 + $0x28] sm:$0xff]  ;;  %s3832_s28 = scalar_lea.vmem [#allocation10], %s2295_s1 }
  0x44   : > { %v2835_v55 = vperm.slane %v377_v54, 0  ;;  %v2837_v56 = vperm.slane %v377_v54, 1  ;;  %v2283_v62 = vld [vmem:[#allocation8 + $0x38] sm:$0xff]  ;;  %v2290_v5 = vld [vmem:[#allocation8 + $0x70] sm:$0xff]  ;;  %v2289_v17 = vld [vmem:[#allocation8 + $0x68] sm:$0xff]  ;;  %s1942_s11 = scalar_lea.hbm %s3907_s5, %s2292_s8  ;;  %s1943_s30 = sshll.u32 %s3832_s28, 4  ;;  %s1944_s30 = int_to_ptr.vmem [resolvable:$true] %s1943_s30 }
  0x45   : > { %502 = vmatpush.bf16.msra.mxu0 %v2133_v22  ;;  %v2291_v63 = vld [vmem:[#allocation8 + $0x78] sm:$0xff]  ;;  %1785 = vmatpush.bf16.msra.mxu2 %v2283_v62  ;;  %v2288_v24 = vld [vmem:[#allocation8 + $0x60] sm:$0xff]  ;;  %v2278_v43 = vld [vmem:[#allocation8 + $0x10] sm:$0xff]  ;;  %s1945_s6 = sshll.u32 %s1942_s11, 4  ;;  %s1946_s6 = int_to_ptr.hbm [resolvable:$true] %s1945_s6 }
  0x46   : > { %541 = vmatpush.bf16.msra.mxu1 %v2137_v23  ;;  %1824 = vmatpush.bf16.msra.mxu3 %v2291_v63  ;;  %v2280_v23 = vld [vmem:[#allocation8 + $0x20] sm:$0xff]  ;;  %v2287_v36 = vld [vmem:[#allocation8 + $0x58] sm:$0xff]  ;;  %v2277_v62 = vld [vmem:[#allocation8 + $0x8] sm:$0xff]  ;;  %s2579_s21 = sshra.s32 %s1946_s6, 4  ;;  %s2580_s21 = int_to_ptr.hbm [resolvable:$true] %s2579_s21 }
  0x47   : > { %v2285_v63 = vld [vmem:[#allocation8 + $0x48] sm:$0xff]  ;;  %s2581_s9 = scalar_lea.hbm %s2580_s21, 96  ;;  %p2586_p8 = scmp.lt.s32.totalorder %s2580_s21, %s3907_s5 }
  0x48   : > { %p2582_p1 = scmp.ne.s32.totalorder %s2580_s21, %s2581_s9  ;;  %p2587_p12 = scmp.lt.s32.totalorder %s2585_s24, %s2581_s9 }
  0x49   : > { %503 = vmatpush.bf16.msra.mxu0 %v2125_v28  ;;  %1786 = vmatpush.bf16.msra.mxu2 %v2282_v4 }
  0x4a   : > { %542 = vmatpush.bf16.msra.mxu1 %v2129_v29  ;;  %1825 = vmatpush.bf16.msra.mxu3 %v2290_v5  ;;  %p2583_p2 = pnand %p2582_p1, %p2788_p3  ;;  %p2588_p13 = por %p2587_p12, %p2586_p8 }
  0x4c   : > { %p2584_p4 = pneg %p2583_p2 }
  0x4d   : > { %504 = vmatpush.bf16.msra.mxu0 %v2117_v34  ;;  %1787 = vmatpush.bf16.msra.mxu2 %v2281_v15 }
  0x4e   : > { %543 = vmatpush.bf16.msra.mxu1 %v2121_v35  ;;  %1826 = vmatpush.bf16.msra.mxu3 %v2289_v17  ;;  %v2279_v35 = vld [vmem:[#allocation8 + $0x18] sm:$0xff]  ;;  %p2589_p0 = pnand %p2588_p13, %p2584_p4 }
  0x51   : > { %505 = vmatpush.bf16.msra.mxu0 %v2109_v40  ;;  %1788 = vmatpush.bf16.msra.mxu2 %v2280_v23  ;;  %v2284_v23 = vld [vmem:[#allocation8 + $0x40] sm:$0xff] }
  0x52   : > { %544 = vmatpush.bf16.msra.mxu1 %v2113_v41  ;;  %1827 = vmatpush.bf16.msra.mxu3 %v2288_v24 }
  0x55   : > { %506 = vmatpush.bf16.msra.mxu0 %v2101_v46  ;;  %1789 = vmatpush.bf16.msra.mxu2 %v2279_v35 }
  0x56   : > { %545 = vmatpush.bf16.msra.mxu1 %v2105_v47  ;;  %1828 = vmatpush.bf16.msra.mxu3 %v2287_v36  ;;  %v2286_v47 = vld [vmem:[#allocation8 + $0x50] sm:$0xff] }
  0x58   : > { %507 = vmatmul.bf16.vlgmr.msra.gmra.mxu0 %v2254_v48 }
  0x59   : > { %546 = vmatmul.bf16.vlgmr.msra.gmra.mxu1 %v2254_v48  ;;  %1790 = vmatpush.bf16.msra.mxu2 %v2278_v43 }
  0x5a   : > { %1829 = vmatpush.bf16.msra.mxu3 %v2286_v47 }
  0x5d   : > { %1791 = vmatpush.bf16.msra.mxu2 %v2277_v62 }
  0x5e   : > { %1830 = vmatpush.bf16.msra.mxu3 %v2285_v63 }
  0x62   : > { %1831 = vmatpush.bf16.msra.mxu3 %v2284_v23 }
  0x68   : > { %512 = vmatmul.bf16.gmra.mxu0 %v2255_v49 }
  0x69   : > { %551 = vmatmul.bf16.gmra.mxu1 %v2255_v49 }
  0x78   : > { %517 = vmatmul.bf16.gmra.mxu0 %v2256_v50 }
  0x79   : > { %556 = vmatmul.bf16.gmra.mxu1 %v2256_v50 }
  0x88   : > { %522 = vmatmul.bf16.gmra.mxu0 %v2257_v51 }
  0x89   : > { %561 = vmatmul.bf16.gmra.mxu1 %v2257_v51 }
  0x98   : > { %527 = vmatmul.bf16.gmra.mxu0 %v2258_v52 }
  0x99   : > { %566 = vmatmul.bf16.gmra.mxu1 %v2258_v52 }
  0xa8   : > { %532 = vmatmul.bf16.gmra.mxu0 %v2259_v53 }
  0xa9   : > { %571 = vmatmul.bf16.gmra.mxu1 %v2259_v53 }
  0xd5   : > { %v508_v57 = vpop.f32.mrf.mxu0 }
  0xd6   : > { %v2840_v58 = vadd.f32 %v508_v57, %v2835_v55  ;;  %v547_v59 = vpop.f32.mrf.mxu1 }
  0xd7   : > { %v2843_v60 = vadd.f32 %v547_v59, %v2837_v56 }
  0xd8   : > { %v2846_v61 = vmul.f32 0.70710677, %v2840_v58  ;;  %v2942_v35 = vmul.f32 0.5, %v2840_v58 }
  0xd9   : > { %v2849_v0 = vmul.f32 0.70710677, %v2843_v60  ;;  %v2945_v36 = vmul.f32 0.5, %v2843_v60 }
  0xda   : > { %v625_v1 = vmul.f32 %v2846_v61, %v2846_v61 }
  0xdb   : > { %v665_v2 = vmul.f32 %v2849_v0, %v2849_v0  ;;  %3935 = vst [vmem:[#allocation16_spill] sm:$0xff] %v2945_v36 }
  0xdc   : > { %v2855_v3 = vmin.f32 %v625_v1, 16.0 }
  0xdd   : > { %v2857_v6 = vmin.f32 %v665_v2, 16.0  ;;  %v510_v7 = vpop.f32.mrf.mxu0 }
  0xde   : > { %v2860_v8 = vadd.f32 %v510_v7, %v2835_v55  ;;  %v549_v9 = vpop.f32.mrf.mxu1  ;;  %v627_v10 = vmul.f32 2.1237322e-06, %v2855_v3  ;;  %v638_v33 = vmul.f32 3.8918573e-05, %v2855_v3 }
  0xdf   : > { %v2864_v11 = vadd.f32 %v549_v9, %v2837_v56  ;;  %v667_v12 = vmul.f32 2.1237322e-06, %v2857_v6 }
  0xe0   : > { %v2868_v13 = vmul.f32 0.70710677, %v2860_v8  ;;  %v628_v18 = vadd.f32 0.00028619796, %v627_v10  ;;  %v639_v44 = vadd.f32 0.001143296, %v638_v33 }
  0xe1   : > { %v2871_v14 = vmul.f32 0.70710677, %v2864_v11  ;;  %v668_v20 = vadd.f32 0.00028619796, %v667_v12 }
  0xe2   : > { %v705_v16 = vmul.f32 %v2868_v13, %v2868_v13  ;;  %v629_v28 = vmul.f32 %v628_v18, %v2855_v3  ;;  %v640_v57 = vmul.f32 %v639_v44, %v2855_v3 }
  0xe3   : > { %v745_v19 = vmul.f32 %v2871_v14, %v2871_v14  ;;  %v669_v30 = vmul.f32 %v668_v20, %v2857_v6 }
  0xe4   : > { %v2877_v21 = vmin.f32 %v705_v16, 16.0  ;;  %v630_v37 = vadd.f32 0.0036580483, %v629_v28  ;;  %v641_v16 = vadd.f32 0.014752088, %v640_v57 }
  0xe5   : > { %v513_v22 = vpop.f32.mrf.mxu0  ;;  %v2879_v25 = vmin.f32 %v745_v19, 16.0  ;;  %v670_v39 = vadd.f32 0.0036580483, %v669_v30 }
  0xe6   : > { %v2882_v26 = vadd.f32 %v513_v22, %v2835_v55  ;;  %v552_v27 = vpop.f32.mrf.mxu1  ;;  %v707_v31 = vmul.f32 2.1237322e-06, %v2877_v21  ;;  %v631_v48 = vmul.f32 %v630_v37, %v2855_v3  ;;  %v2276_v22 = vld [vmem:[#allocation8] sm:$0xff] }
  0xe7   : > { %v2886_v29 = vadd.f32 %v552_v27, %v2837_v56  ;;  %v747_v34 = vmul.f32 2.1237322e-06, %v2879_v25  ;;  %v671_v51 = vmul.f32 %v670_v39, %v2857_v6  ;;  %1792 = vmatpush.bf16.msra.mxu2 %v2276_v22  ;;  %v642_v39 = vmul.f32 %v641_v16, %v2855_v3 }
  0xe8   : > { %v2891_v32 = vmul.f32 0.70710677, %v2882_v26  ;;  %v708_v41 = vadd.f32 0.00028619796, %v707_v31  ;;  %v632_v1 = vadd.f32 0.05243302, %v631_v48 }
  0xe9   : > { %v2896_v38 = vmul.f32 0.70710677, %v2886_v29  ;;  %v748_v45 = vadd.f32 0.00028619796, %v747_v34  ;;  %v672_v5 = vadd.f32 0.05243302, %v671_v51 }
  0xea   : > { %v785_v40 = vmul.f32 %v2891_v32, %v2891_v32  ;;  %v709_v54 = vmul.f32 %v708_v41, %v2877_v21  ;;  %v633_v24 = vmul.f32 %v632_v1, %v2855_v3  ;;  %v2968_v51 = vmul.f32 0.5, %v2882_v26 }
  0xeb   : > { %v825_v49 = vmul.f32 %v2896_v38, %v2896_v38  ;;  %v749_v59 = vmul.f32 %v748_v45, %v2879_v25  ;;  %v673_v30 = vmul.f32 %v672_v5, %v2857_v6  ;;  %v643_v57 = vadd.f32 0.112945676, %v642_v39 }
  0xec   : > { %v2907_v52 = vmin.f32 %v785_v40, 16.0  ;;  %v710_v10 = vadd.f32 0.0036580483, %v709_v54  ;;  %v2950_v40 = vmul.f32 0.5, %v2860_v8  ;;  %v634_v44 = vadd.f32 0.18741608, %v633_v24 }
  0xed   : > { %v515_v42 = vpop.f32.mrf.mxu0  ;;  %v2915_v2 = vmin.f32 %v825_v49, 16.0  ;;  %v750_v17 = vadd.f32 0.0036580483, %v749_v59  ;;  %v674_v60 = vadd.f32 0.18741608, %v673_v30  ;;  %v2965_v49 = vmul.f32 0.5, %v2864_v11 }
  0xee   : > { %v554_v46 = vpop.f32.mrf.mxu1  ;;  %v2904_v50 = vadd.f32 %v515_v42, %v2835_v55  ;;  %v787_v7 = vmul.f32 2.1237322e-06, %v2907_v52  ;;  %v711_v37 = vmul.f32 %v710_v10, %v2877_v21  ;;  %3937 = vst [vmem:[#allocation18_spill] sm:$0xff] %v2968_v51  ;;  %v644_v23 = vmul.f32 %v643_v57, %v2855_v3 }
  0xef   : > { %v2910_v53 = vadd.f32 %v554_v46, %v2837_v56  ;;  %v827_v27 = vmul.f32 2.1237322e-06, %v2915_v2  ;;  %v751_v41 = vmul.f32 %v750_v17, %v2879_v25  ;;  %3936 = vst [vmem:[#allocation17_spill] sm:$0xff] %v2965_v49  ;;  %v675_v26 = vmul.f32 %v674_v60, %v2857_v6 }
  0xf0   : > { %v2918_v4 = vmul.f32 0.70710677, %v2904_v50  ;;  %v788_v31 = vadd.f32 0.00028619796, %v787_v7  ;;  %v712_v48 = vadd.f32 0.05243302, %v711_v37  ;;  %v635_v7 = vmul.f32 %v634_v44, %v2855_v3 }
  0xf1   : > { %v2922_v9 = vmul.f32 0.70710677, %v2910_v53  ;;  %v828_v58 = vadd.f32 0.00028619796, %v827_v27  ;;  %v752_v59 = vadd.f32 0.05243302, %v751_v41 }
  0xf2   : > { %v865_v12 = vmul.f32 %v2918_v4, %v2918_v4  ;;  %v789_v46 = vmul.f32 %v788_v31, %v2907_v52  ;;  %v636_v37 = vadd.f32 1.1283791, %v635_v7  ;;  %v676_v44 = vadd.f32 1.1283791, %v675_v26 }
  0xf3   : > { %v905_v18 = vmul.f32 %v2922_v9, %v2922_v9  ;;  %v829_v10 = vmul.f32 %v828_v58, %v2915_v2  ;;  %v753_v24 = vmul.f32 %v752_v59, %v2879_v25  ;;  %v645_v7 = vadd.f32 0.4994258, %v644_v23 }
  0xf4   : > { %v2933_v28 = vmin.f32 %v865_v12, 16.0 }
  0xf5   : > { %v518_v15 = vpop.f32.mrf.mxu0  ;;  %v2936_v33 = vmin.f32 %v905_v18, 16.0  ;;  %v713_v18 = vmul.f32 %v712_v48, %v2877_v21  ;;  %v830_v39 = vadd.f32 0.0036580483, %v829_v10  ;;  %v754_v59 = vadd.f32 0.18741608, %v753_v24 }
  0xf6   : > { %v2929_v19 = vadd.f32 %v518_v15, %v2835_v55  ;;  %v557_v20 = vpop.f32.mrf.mxu1  ;;  %v867_v42 = vmul.f32 2.1237322e-06, %v2933_v28  ;;  %v790_v15 = vadd.f32 0.0036580483, %v789_v46 }
  0xf7   : > { %3934 = vst [vmem:[#allocation15_spill] sm:$0xff] %v2936_v33  ;;  %v2939_v34 = vadd.f32 %v557_v20, %v2837_v56  ;;  %v907_v45 = vmul.f32 2.1237322e-06, %v2936_v33  ;;  %v714_v46 = vadd.f32 0.18741608, %v713_v18  ;;  %v831_v10 = vmul.f32 %v830_v39, %v2915_v2 }
  0xf8   : > { %v2955_v43 = vmul.f32 0.70710677, %v2929_v19  ;;  %v868_v62 = vadd.f32 0.00028619796, %v867_v42  ;;  %v791_v58 = vmul.f32 %v790_v15, %v2907_v52  ;;  %v3027_v39 = vmul.f32 %v676_v44, %v2849_v0 }
  0xf9   : > { %v2962_v8 = vmul.f32 0.70710677, %v2939_v34  ;;  %v908_v12 = vadd.f32 0.00028619796, %v907_v45  ;;  %v832_v0 = vadd.f32 0.05243302, %v831_v10 }
  0xfa   : > { %v945_v47 = vmul.f32 %v2955_v43, %v2955_v43  ;;  %v869_v27 = vmul.f32 %v868_v62, %v2933_v28  ;;  %v792_v15 = vadd.f32 0.05243302, %v791_v58  ;;  %v646_v58 = vmul.f32 %v645_v7, %v2855_v3 }
  0xfb   : > { %v985_v1 = vmul.f32 %v2962_v8, %v2962_v8  ;;  %v909_v41 = vmul.f32 %v908_v12, %v2936_v33  ;;  %v3051_v10 = vmul.f32 0.5, %v2910_v53 }
  0xfc   : > { %v2970_v63 = vmin.f32 %v945_v47, 16.0  ;;  %v3000_v47 = vmul.f32 0.5, %v2886_v29  ;;  %v870_v62 = vadd.f32 0.0036580483, %v869_v27  ;;  %v3019_v27 = vmul.f32 %v636_v37, %v2846_v61 }
  0xfd   : > { %v520_v54 = vpop.f32.mrf.mxu0  ;;  %v2981_v17 = vmin.f32 %v985_v1, 16.0  ;;  %v910_v12 = vadd.f32 0.0036580483, %v909_v41  ;;  %v3030_v41 = vmul.f32 0.5, %v2904_v50  ;;  %v793_v3 = vmul.f32 %v792_v15, %v2907_v52  ;;  %3942 = vst [vmem:[#allocation23_spill] sm:$0xff] %v3051_v10 }
  0xfe   : > { %v559_v5 = vpop.f32.mrf.mxu1  ;;  %v2977_v11 = vadd.f32 %v520_v54, %v2835_v55  ;;  %v947_v16 = vmul.f32 2.1237322e-06, %v2970_v63  ;;  %3938 = vst [vmem:[#allocation19_spill] sm:$0xff] %v3000_v47  ;;  %v3056_v15 = vadd.f32 1.0, %v646_v58 }
  0xff   : > { %v2988_v22 = vadd.f32 %v559_v5, %v2837_v56  ;;  %v987_v31 = vmul.f32 2.1237322e-06, %v2981_v17  ;;  %3940 = vst [vmem:[#allocation21_spill] sm:$0xff] %v3030_v41  ;;  %v794_v41 = vadd.f32 0.18741608, %v793_v3 }
 0x100   : > { %v2985_v20 = vmul.f32 0.70710677, %v2977_v11  ;;  %v948_v30 = vadd.f32 0.00028619796, %v947_v16  ;;  %2397 = vrcp.f32 %v3056_v15  ;;  %vm653_vm1 = vweird.f32 %v3056_v15 }
 0x101   : > { %v988_v60 = vadd.f32 0.00028619796, %v987_v31  ;;  %v3005_v54 = vmul.f32 0.70710677, %v2988_v22 }
 0x102   : > { %v1025_v42 = vmul.f32 %v2985_v20, %v2985_v20  ;;  %v949_v45 = vmul.f32 %v948_v30, %v2970_v63 }
 0x103   : > { %v1065_v29 = vmul.f32 %v3005_v54, %v3005_v54  ;;  %v989_v18 = vmul.f32 %v988_v60, %v2981_v17 }
 0x104   : > { %v3002_v48 = vmin.f32 %v1025_v42, 16.0  ;;  %v950_v16 = vadd.f32 0.0036580483, %v949_v45  ;;  %v871_v42 = vmul.f32 %v870_v62, %v2933_v28  ;;  %v911_v45 = vmul.f32 %v910_v12, %v2936_v33 }
 0x105   : > { %v523_v57 = vpop.f32.mrf.mxu0  ;;  %v3021_v23 = vmin.f32 %v1065_v29, 16.0  ;;  %v990_v44 = vadd.f32 0.0036580483, %v989_v18  ;;  %v755_v62 = vmul.f32 %v754_v59, %v2879_v25 }
 0x106   : > { %v3008_v1 = vadd.f32 %v523_v57, %v2835_v55  ;;  %v562_v5 = vpop.f32.mrf.mxu1  ;;  %v1027_v26 = vmul.f32 2.1237322e-06, %v3002_v48  ;;  %v715_v57 = vmul.f32 %v714_v46, %v2877_v21  ;;  %v912_v18 = vadd.f32 0.05243302, %v911_v45 }
 0x107   : > { %v3016_v24 = vadd.f32 %v562_v5, %v2837_v56  ;;  %v1067_v37 = vmul.f32 2.1237322e-06, %v3021_v23  ;;  %v951_v5 = vmul.f32 %v950_v16, %v2970_v63 }
 0x108   : > { %v1028_v30 = vadd.f32 0.00028619796, %v1027_v26  ;;  %v3024_v31 = vmul.f32 0.70710677, %v3008_v1  ;;  %v872_v26 = vadd.f32 0.05243302, %v871_v42  ;;  %v991_v42 = vmul.f32 %v990_v44, %v2981_v17 }
 0x109   : > { %v3041_v50 = vmul.f32 0.70710677, %v3016_v24  ;;  %v1068_v29 = vadd.f32 0.00028619796, %v1067_v37  ;;  %v716_v16 = vadd.f32 1.1283791, %v715_v57  ;;  %v913_v57 = vmul.f32 %v912_v18, %v2936_v33 }
 0x10a   : > { %3939 = vst [vmem:[#allocation20_spill] sm:$0xff] %v3024_v31  ;;  %v1029_v61 = vmul.f32 %v1028_v30, %v3002_v48  ;;  %v1105_v60 = vmul.f32 %v3024_v31, %v3024_v31  ;;  %v952_v51 = vadd.f32 0.05243302, %v951_v5  ;;  %v873_v45 = vmul.f32 %v872_v26, %v2933_v28 }
 0x10b   : > { %3941 = vst [vmem:[#allocation22_spill] sm:$0xff] %v3041_v50  ;;  %v1145_v46 = vmul.f32 %v3041_v50, %v3041_v50  ;;  %v3079_v5 = vmul.f32 0.5, %v2929_v19  ;;  %v795_v26 = vmul.f32 %v794_v41, %v2907_v52 }
 0x10c   : > { %v1030_v7 = vadd.f32 0.0036580483, %v1029_v61  ;;  %v3046_v30 = vmin.f32 %v1105_v60, 16.0  ;;  %v833_v61 = vmul.f32 %v832_v0, %v2915_v2  ;;  %v756_v60 = vadd.f32 1.1283791, %v755_v62 }
 0x10d   : > { %v525_v12 = vpop.f32.mrf.mxu0  ;;  %v3060_v37 = vmin.f32 %v1145_v46, 16.0  ;;  %v3076_v62 = vmul.f32 %v716_v16, %v2868_v13  ;;  %3944 = vst [vmem:[#allocation25_spill] sm:$0xff] %v3079_v5  ;;  %v874_v19 = vadd.f32 0.18741608, %v873_v45 }
 0x10e   : > { %v3054_v47 = vadd.f32 %v525_v12, %v2835_v55  ;;  %v564_v59 = vpop.f32.mrf.mxu1  ;;  %v1031_v53 = vmul.f32 %v1030_v7, %v3002_v48  ;;  %v1069_v12 = vmul.f32 %v1068_v29, %v3021_v23  ;;  %v1107_v10 = vmul.f32 2.1237322e-06, %v3046_v30 }
 0x10f   : > { %v3067_v58 = vadd.f32 %v564_v59, %v2837_v56  ;;  %v1147_v0 = vmul.f32 2.1237322e-06, %v3060_v37  ;;  %v834_v3 = vadd.f32 0.18741608, %v833_v61  ;;  %v992_v7 = vadd.f32 0.05243302, %v991_v42 }
 0x110   : > { %v3072_v44 = vmul.f32 0.70710677, %v3054_v47  ;;  %v953_v29 = vmul.f32 %v952_v51, %v2970_v63  ;;  %v1032_v46 = vadd.f32 0.05243302, %v1031_v53  ;;  %v3086_v50 = vmul.f32 %v756_v60, %v2871_v14  ;;  %v3101_v60 = vpop.eup %2397 }
 0x111   : > { %v1070_v31 = vadd.f32 0.0036580483, %v1069_v12  ;;  %v1108_v13 = vadd.f32 0.00028619796, %v1107_v10  ;;  %v3089_v16 = vmul.f32 0.70710677, %v3067_v58  ;;  %v835_v51 = vmul.f32 %v834_v3, %v2915_v2 }
 0x112   : > { %3943 = vst [vmem:[#allocation24_spill] sm:$0xff] %v3072_v44  ;;  %v1185_v18 = vmul.f32 %v3072_v44, %v3072_v44  ;;  %v914_v61 = vadd.f32 0.18741608, %v913_v57  ;;  %v1148_v42 = vadd.f32 0.00028619796, %v1147_v0  ;;  %v3096_v53 = vmul.f32 0.5, %v2939_v34 }
 0x113   : > { %3945 = vst [vmem:[#allocation26_spill] sm:$0xff] %v3089_v16  ;;  %v993_v5 = vmul.f32 %v992_v7, %v2981_v17  ;;  %v796_v10 = vadd.f32 1.1283791, %v795_v26  ;;  %v954_v12 = vadd.f32 0.18741608, %v953_v29  ;;  %v1033_v45 = vmul.f32 %v1032_v46, %v3002_v48 }
 0x114   : > { %3946 = vst [vmem:[#allocation27_spill] sm:$0xff] %v3096_v53  ;;  %v3099_v14 = vmin.f32 %v1185_v18, 16.0  ;;  %v718_v57 = vmul.f32 3.8918573e-05, %v2877_v21  ;;  %v3106_v0 = vmul.f32 0.5, %v2977_v11  ;;  %v1071_v3 = vmul.f32 %v1070_v31, %v3021_v23 }
 0x115   : > { %v528_v59 = vpop.f32.mrf.mxu0  ;;  %v1109_v34 = vmul.f32 %v1108_v13, %v3046_v30  ;;  %v1225_v7 = vmul.f32 %v3089_v16, %v3089_v16  ;;  %v875_v18 = vmul.f32 %v874_v19, %v2933_v28  ;;  %v1149_v26 = vmul.f32 %v1148_v42, %v3060_v37 }
 0x116   : > { %v3092_v41 = vadd.f32 %v528_v59, %v2835_v55  ;;  %3947 = vst [vmem:[#allocation28_spill] sm:$0xff] %v3099_v14  ;;  %v915_v59 = vmul.f32 %v914_v61, %v2936_v33  ;;  %v567_v46 = vpop.f32.mrf.mxu1  ;;  %v836_v53 = vadd.f32 1.1283791, %v835_v51  ;;  %v994_v11 = vadd.f32 0.18741608, %v993_v5 }
 0x117   : > { %3948 = vst [vmem:[#allocation29_spill] sm:$0xff] %v3106_v0  ;;  %v1187_v0 = vmul.f32 2.1237322e-06, %v3099_v14  ;;  %v649_v31 = vmul.f32 %v3101_v60, %v3056_v15  ;;  %v3122_v13 = vmul.f32 %v796_v10, %v2891_v32  ;;  %v955_v19 = vmul.f32 %v954_v12, %v2970_v63 }
 0x118   : > { %v3116_v29 = vmul.f32 0.70710677, %v3092_v41  ;;  %v1034_v16 = vadd.f32 0.18741608, %v1033_v45  ;;  %v3126_v61 = vmul.f32 0.5, %v2988_v22  ;;  %v3128_v49 = vmin.f32 %v1225_v7, 16.0 }
 0x119   : > { %v1072_v42 = vadd.f32 0.05243302, %v1071_v3  ;;  %v1110_v44 = vadd.f32 0.0036580483, %v1109_v34  ;;  %v3131_v5 = vadd.f32 %v567_v46, %v2837_v56  ;;  %v876_v51 = vadd.f32 1.1283791, %v875_v18 }
 0x11a   : > { %3949 = vst [vmem:[#allocation30_spill] sm:$0xff] %v3126_v61  ;;  %v916_v36 = vadd.f32 1.1283791, %v915_v59  ;;  %v1150_v33 = vadd.f32 0.0036580483, %v1149_v26  ;;  %v1265_v32 = vmul.f32 %v3116_v29, %v3116_v29  ;;  %v3136_v10 = vmul.f32 %v836_v53, %v2896_v38 }
 0x11b   : > { %v995_v12 = vmul.f32 %v994_v11, %v2981_v17  ;;  %v1188_v22 = vadd.f32 0.00028619796, %v1187_v0  ;;  %v650_v45 = vsub.f32 1.0, %v649_v31  ;;  %v956_v3 = vadd.f32 1.1283791, %v955_v19 }
 0x11c   : > { %v1035_v34 = vmul.f32 %v1034_v16, %v3002_v48  ;;  %v3141_v7 = vmul.f32 0.5, %v3008_v1  ;;  %v3144_v18 = vmul.f32 0.5, %v3016_v24  ;;  %v1073_v59 = vmul.f32 %v1072_v42, %v3021_v23 }
 0x11d   : > { %v1111_v26 = vmul.f32 %v1110_v44, %v3046_v30  ;;  %v1227_v38 = vmul.f32 2.1237322e-06, %v3128_v49  ;;  %v3150_v53 = vmul.f32 0.70710677, %v3131_v5  ;;  %v3153_v0 = vmul.f32 %v876_v51, %v2918_v4 }
 0x11e   : > { %3950 = vst [vmem:[#allocation31_spill] sm:$0xff] %v3141_v7  ;;  %v3156_v16 = vmul.f32 %v916_v36, %v2922_v9  ;;  %v1151_v1 = vmul.f32 %v1150_v33, %v3060_v37  ;;  %v3159_v46 = vmin.f32 %v1265_v32, 16.0  ;;  %v996_v24 = vadd.f32 1.1283791, %v995_v12 }
 0x11f   : > { %3951 = vst [vmem:[#allocation32_spill] sm:$0xff] %v3144_v18  ;;  %v3162_v11 = vmul.f32 0.5, %v3054_v47  ;;  %v1189_v44 = vmul.f32 %v1188_v22, %v3099_v14  ;;  %v651_v31 = vmul.f32 %v3101_v60, %v650_v45  ;;  %v3167_v19 = vmul.f32 %v956_v3, %v2955_v43 }
 0x120   : > { %v3169_v4 = vadd.f32 1.1283791, %v1035_v34  ;;  %v3172_v9 = vmul.f32 0.5, %v3067_v58  ;;  %v719_v36 = vadd.f32 0.001143296, %v718_v57  ;;  %v1305_v47 = vmul.f32 %v3150_v53, %v3150_v53 }
 0x121   : > { %3952 = vst [vmem:[#allocation33_spill] sm:$0xff] %v3162_v11  ;;  %v1074_v33 = vadd.f32 0.18741608, %v1073_v59  ;;  %v1112_v42 = vadd.f32 0.05243302, %v1111_v26  ;;  %v652_v3 = vadd.f32 %v3101_v60, %v651_v31  ;;  %vm654_vm0 = vweird.f32 %v3101_v60 }
 0x122   : > { %3953 = vst [vmem:[#allocation34_spill] sm:$0xff] %v3167_v19  ;;  %v1228_v51 = vadd.f32 0.00028619796, %v1227_v38  ;;  %v1152_v32 = vadd.f32 0.05243302, %v1151_v1  ;;  %v720_v22 = vmul.f32 %v719_v36, %v2877_v21  ;;  %v3183_v57 = vmul.f32 %v996_v24, %v2962_v8  ;;  %vm3192_vm2 = vmor %vm653_vm1, %vm654_vm0 }
 0x123   : > { %3954 = vst [vmem:[#allocation35_spill] sm:$0xff] %v3172_v9  ;;  %v1267_v12 = vmul.f32 2.1237322e-06, %v3159_v46  ;;  %v678_v43 = vmul.f32 3.8918573e-05, %v2857_v6  ;;  %v659_v34 = vand.u32 2147483648, %v3056_v15  ;;  %v1113_v31 = vmul.f32 %v1112_v42, %v3046_v30 }
 0x124   : > { %v1190_v45 = vadd.f32 0.0036580483, %v1189_v44  ;;  %v758_v58 = vmul.f32 3.8918573e-05, %v2879_v25  ;;  %3955 = vst [vmem:[#allocation36_spill] sm:$0xff] %v3183_v57  ;;  %v1229_v38 = vmul.f32 %v1228_v51, %v3128_v49  ;;  %v3187_v1 = vmin.f32 %v1305_v47, 16.0 }
 0x125   : > { %v721_v59 = vadd.f32 0.014752088, %v720_v22  ;;  %v679_v26 = vadd.f32 0.001143296, %v678_v43  ;;  %v657_v44 = vand.u32 2147483647, %v3056_v15  ;;  %v1153_v43 = vmul.f32 %v1152_v32, %v3060_v37 }
 0x126   : > { %v759_v22 = vadd.f32 0.001143296, %v758_v58  ;;  %v1191_v51 = vmul.f32 %v1190_v45, %v3099_v14  ;;  %v1268_v47 = vadd.f32 0.00028619796, %v1267_v12  ;;  %v656_v15 = vsel %vm3192_vm2, %v3101_v60, %v652_v3 }
 0x127   : > { %v722_v8 = vmul.f32 %v721_v59, %v2877_v21  ;;  %v680_v24 = vmul.f32 %v679_v26, %v2857_v6  ;;  %v660_v9 = vor.u32 1.1754944e-38, %v659_v34  ;;  %v1230_v7 = vadd.f32 0.0036580483, %v1229_v38 }
 0x128   : > { %v760_v11 = vmul.f32 %v759_v22, %v2879_v25  ;;  %v3205_v59 = vmul.f32 0.5, %v3092_v41  ;;  %v1307_v58 = vmul.f32 2.1237322e-06, %v3187_v1  ;;  %vm658_vm3 = vcmp.eq.f32.partialorder %v657_v44, 8.507059e+37 }
 0x129   : > { %v723_v42 = vadd.f32 0.112945676, %v722_v8  ;;  %v681_v18 = vadd.f32 0.014752088, %v680_v24  ;;  %v661_v32 = vsel %vm658_vm3, %v660_v9, %v656_v15  ;;  %v1114_v36 = vadd.f32 0.18741608, %v1113_v31 }
 0x12a   : > { %3958 = vst [vmem:[#allocation37_spill] sm:$0xff] %v3205_v59  ;;  %v761_v26 = vadd.f32 0.014752088, %v760_v11  ;;  %v1154_v60 = vadd.f32 0.18741608, %v1153_v43  ;;  %v1269_v3 = vmul.f32 %v1268_v47, %v3159_v46  ;;  %v1075_v22 = vmul.f32 %v1074_v33, %v3021_v23 }
 0x12b   : > { %v724_v45 = vmul.f32 %v723_v42, %v2877_v21  ;;  %v682_v12 = vmul.f32 %v681_v18, %v2857_v6  ;;  %v798_v34 = vmul.f32 3.8918573e-05, %v2907_v52  ;;  %v1192_v8 = vadd.f32 0.05243302, %v1191_v51 }
 0x12c   : > { %v762_v41 = vmul.f32 %v761_v26, %v2879_v25  ;;  %v1308_v44 = vadd.f32 0.00028619796, %v1307_v58  ;;  %v662_v9 = vmul.f32 %v661_v32, %v3019_v27  ;;  %v1231_v18 = vmul.f32 %v1230_v7, %v3128_v49 }
 0x12d   : > { %v725_v38 = vadd.f32 0.4994258, %v724_v45  ;;  %v683_v24 = vadd.f32 0.112945676, %v682_v12  ;;  %v799_v15 = vadd.f32 0.001143296, %v798_v34  ;;  %v1115_v47 = vmul.f32 %v1114_v36, %v3046_v30 }
 0x12e   : > { %v763_v43 = vadd.f32 0.112945676, %v762_v41  ;;  %v1155_v51 = vmul.f32 %v1154_v60, %v3060_v37  ;;  %v1270_v42 = vadd.f32 0.0036580483, %v1269_v3  ;;  %v1193_v33 = vmul.f32 %v1192_v8, %v3099_v14 }
 0x12f   : > { %v726_v11 = vmul.f32 %v725_v38, %v2877_v21  ;;  %v684_v31 = vmul.f32 %v683_v24, %v2857_v6  ;;  %v800_v45 = vmul.f32 %v799_v15, %v2907_v52  ;;  %v3226_v7 = vmul.f32 0.5, %v3131_v5 }
 0x130   : > { %v764_v32 = vmul.f32 %v763_v43, %v2879_v25  ;;  %v1309_v21 = vmul.f32 %v1308_v44, %v3187_v1  ;;  %v2162_v12 = vclamps-f32 %v662_v9, 1.0  ;;  %v3229_v36 = vadd.f32 1.1283791, %v1075_v22 }
 0x131   : > { %v3222_v58 = vadd.f32 1.0, %v726_v11  ;;  %v685_v27 = vadd.f32 0.4994258, %v684_v31  ;;  %3959 = vst [vmem:[#allocation38_spill] sm:$0xff] %v3226_v7  ;;  %v801_v26 = vadd.f32 0.014752088, %v800_v45  ;;  %v1271_v34 = vmul.f32 %v1270_v42, %v3159_v46  ;;  %v530_v31 = vpop.f32.mrf.mxu0 }
 0x132   : > { %v1232_v60 = vadd.f32 0.05243302, %v1231_v18  ;;  %v878_v3 = vmul.f32 3.8918573e-05, %v2933_v28  ;;  %v765_v38 = vadd.f32 0.4994258, %v764_v32  ;;  %v3238_v5 = vmul.f32 %v3169_v4, %v2985_v20 }
 0x133   : > { %2399 = vrcp.f32 %v3222_v58  ;;  %v686_v8 = vmul.f32 %v685_v27, %v2857_v6  ;;  %v802_v24 = vmul.f32 %v801_v26, %v2907_v52  ;;  %v3240_v41 = vadd.f32 1.1283791, %v1115_v47  ;;  %v569_v6 = vpop.f32.mrf.mxu1 }
 0x134   : > { %3960 = vst [vmem:[#allocation39_spill] sm:$0xff] %v3238_v5  ;;  %v3242_v22 = vadd.f32 1.1283791, %v1155_v51  ;;  %v1194_v44 = vadd.f32 0.18741608, %v1193_v33  ;;  %v1585_v15 = vadd.f32 1.0, %v2162_v12  ;;  %v766_v11 = vmul.f32 %v765_v38, %v2879_v25 }
 0x135   : > { %v1310_v9 = vadd.f32 0.0036580483, %v1309_v21  ;;  %v3244_v18 = vadd.f32 1.0, %v686_v8  ;;  %v3248_v43 = vmul.f32 %v1232_v60, %v3128_v49  ;;  %v3251_v42 = vadd.f32 %v530_v31, %v2835_v55 }
 0x136   : > { %v879_v20 = vadd.f32 0.001143296, %v878_v3  ;;  %v838_v4 = vmul.f32 3.8918573e-05, %v2915_v2  ;;  %v3254_v47 = vadd.f32 0.05243302, %v1271_v34  ;;  %v3258_v51 = vadd.f32 %v569_v6, %v2837_v56 }
 0x137   : > { %2401 = vrcp.f32 %v3244_v18  ;;  %v803_v45 = vadd.f32 0.112945676, %v802_v24  ;;  %v737_v33 = vand.u32 2147483647, %v3222_v58  ;;  %v739_v27 = vand.u32 2147483648, %v3222_v58 }
 0x138   : > { %3961 = vst [vmem:[#allocation40_spill] sm:$0xff] %v3258_v51  ;;  %v3262_v32 = vadd.f32 1.0, %v766_v11  ;;  %v3265_v21 = vmul.f32 0.70710677, %v3251_v42  ;;  %v3268_v12 = vmul.f32 %v1194_v44, %v3099_v14  ;;  %v3271_v26 = vmul.f32 %v1310_v9, %v3187_v1 }
 0x139   : > { %v2400_v25 = vpop.eup %2399  ;;  %v3275_v3 = vmul.f32 %v1585_v15, %v2942_v35  ;;  %vm733_vm4 = vweird.f32 %v3222_v58  ;;  %v880_v34 = vmul.f32 %v879_v20, %v2933_v28  ;;  %v839_v8 = vadd.f32 0.001143296, %v838_v4 }
 0x13a   : > { %v729_v60 = vmul.f32 %v2400_v25, %v3222_v58  ;;  %2403 = vrcp.f32 %v3262_v32  ;;  %v1345_v24 = vmul.f32 %v3265_v21, %v3265_v21  ;;  %v3283_v44 = vmul.f32 0.70710677, %v3258_v51 }
 0x13b   : > { %v804_v9 = vmul.f32 %v803_v45, %v2907_v52  ;;  %vm734_vm5 = vweird.f32 %v2400_v25  ;;  %vm3286_vm6 = vcmp.eq.f32.partialorder %v737_v33, 8.507059e+37  ;;  %v740_v15 = vor.u32 1.1754944e-38, %v739_v27 }
 0x13c   : > { %v730_v38 = vsub.f32 1.0, %v729_v60  ;;  %3962 = vst [vmem:[#allocation41_spill] sm:$0xff] %v3283_v44  ;;  %v697_v11 = vand.u32 2147483647, %v3244_v18  ;;  %v3291_v20 = vmin.f32 %v1345_v24, 16.0  ;;  %v1385_v4 = vmul.f32 %v3283_v44, %v3283_v44  ;;  %v533_v60 = vpop.f32.mrf.mxu0  ;;  %vm735_vm7 = vmor %vm733_vm4, %vm734_vm5 }
 0x13d   : > { %v2402_v31 = vpop.eup %2401  ;;  %v805_v7 = vadd.f32 0.4994258, %v804_v9  ;;  %v699_v45 = vand.u32 2147483648, %v3244_v18  ;;  %v3298_v33 = vadd.f32 %v533_v60, %v2835_v55  ;;  %v881_v59 = vadd.f32 0.014752088, %v880_v34 }
 0x13e   : > { %v731_v6 = vmul.f32 %v2400_v25, %v730_v38  ;;  %v689_v51 = vmul.f32 %v2402_v31, %v3244_v18  ;;  %v1347_v61 = vmul.f32 2.1237322e-06, %v3291_v20  ;;  %v3301_v57 = vmin.f32 %v1385_v4, 16.0 }
 0x13f   : > { %3965 = vst [vmem:[#allocation42_spill] sm:$0xff] %v3298_v33  ;;  %v840_v38 = vmul.f32 %v839_v8, %v2915_v2  ;;  %vm693_vm8 = vweird.f32 %v3244_v18  ;;  %v3309_v44 = vmul.f32 0.70710677, %v3298_v33  ;;  %v806_v34 = vmul.f32 %v805_v7, %v2907_v52  ;;  %v572_v7 = vpop.f32.mrf.mxu1 }
 0x140   : > { %v732_v27 = vadd.f32 %v2400_v25, %v731_v6  ;;  %v2404_v24 = vpop.eup %2403  ;;  %v690_v9 = vsub.f32 1.0, %v689_v51  ;;  %vm3312_vm9 = vcmp.eq.f32.partialorder %v697_v11, 8.507059e+37  ;;  %v1348_v4 = vadd.f32 0.00028619796, %v1347_v61 }
 0x141   : > { %v769_v8 = vmul.f32 %v2404_v24, %v3262_v32  ;;  %vm694_vm10 = vweird.f32 %v2402_v31  ;;  %v700_v51 = vor.u32 1.1754944e-38, %v699_v45  ;;  %v777_v19 = vand.u32 2147483647, %v3262_v32 }
 0x142   : > { %v736_v6 = vsel %vm735_vm7, %v2400_v25, %v732_v27  ;;  %v691_v5 = vmul.f32 %v2402_v31, %v690_v9  ;;  %v1387_v52 = vmul.f32 2.1237322e-06, %v3301_v57  ;;  %v779_v11 = vand.u32 2147483648, %v3262_v32  ;;  %vm695_vm11 = vmor %vm693_vm8, %vm694_vm10 }
 0x143   : > { %v741_v58 = vsel %vm3286_vm6, %v740_v15, %v736_v6  ;;  %v770_v33 = vsub.f32 1.0, %v769_v8  ;;  %v1425_v61 = vmul.f32 %v3309_v44, %v3309_v44  ;;  %v3325_v27 = vadd.f32 1.0, %v806_v34 }
 0x144   : > { %v742_v14 = vmul.f32 %v741_v58, %v3076_v62  ;;  %v692_v25 = vadd.f32 %v2402_v31, %v691_v5  ;;  %vm774_vm12 = vweird.f32 %v2404_v24  ;;  %v1349_v62 = vmul.f32 %v1348_v4, %v3291_v20 }
 0x145   : > { %v771_v15 = vmul.f32 %v2404_v24, %v770_v33  ;;  %vm773_vm13 = vweird.f32 %v3262_v32  ;;  %v3332_v5 = vadd.f32 %v572_v7, %v2837_v56  ;;  %2405 = vrcp.f32 %v3325_v27 }
 0x146   : > { %v2164_v35 = vclamps-f32 %v742_v14, 1.0  ;;  %v696_v45 = vsel %vm695_vm11, %v2402_v31, %v692_v25  ;;  %v1388_v6 = vadd.f32 0.00028619796, %v1387_v52  ;;  %vm775_vm14 = vmor %vm773_vm13, %vm774_vm12  ;;  %v780_v33 = vor.u32 1.1754944e-38, %v779_v11 }
 0x147   : > { %v701_v34 = vsel %vm3312_vm9, %v700_v51, %v696_v45  ;;  %v772_v14 = vadd.f32 %v2404_v24, %v771_v15  ;;  %v3338_v8 = vmin.f32 %v1425_v61, 16.0  ;;  %v882_v31 = vmul.f32 %v881_v59, %v2933_v28 }
 0x148   : > { %v1587_v9 = vadd.f32 1.0, %v2164_v35  ;;  %v702_v18 = vmul.f32 %v701_v34, %v3027_v39  ;;  %vm778_vm15 = vcmp.eq.f32.partialorder %v777_v19, 8.507059e+37  ;;  %v1350_v58 = vadd.f32 0.0036580483, %v1349_v62 }
 0x149   : > { %v776_v4 = vsel %vm775_vm14, %v2404_v24, %v772_v14  ;;  %v1312_v7 = vadd.f32 0.05243302, %v3271_v26  ;;  %v3344_v51 = vmul.f32 0.70710677, %v3332_v5  ;;  %v1234_v39 = vadd.f32 0.18741608, %v3248_v43 }
 0x14a   : > { %v1611_v32 = vmul.f32 %v1587_v9, %v2950_v40  ;;  %v2163_v25 = vclamps-f32 %v702_v18, 1.0  ;;  %v781_v60 = vsel %vm778_vm15, %v780_v33, %v776_v4  ;;  %v1389_v59 = vmul.f32 %v1388_v6, %v3301_v57  ;;  %v3968_v33 = vld [vmem:[#allocation15_spill] sm:$0xff] }
 0x14b   : > { %v782_v11 = vmul.f32 %v781_v60, %v3086_v50  ;;  %v2406_v61 = vpop.eup %2405  ;;  %v3352_v40 = vmul.f32 %v3229_v36, %v3005_v54  ;;  %v1427_v19 = vmul.f32 2.1237322e-06, %v3338_v8  ;;  %v883_v26 = vadd.f32 0.112945676, %v882_v31  ;;  %v3969_v31 = vld [vmem:[#allocation16_spill] sm:$0xff] }
 0x14c   : > { %v1645_v52 = vpack.c.bf16 %v1611_v32, %v3275_v3  ;;  %v841_v24 = vadd.f32 0.014752088, %v840_v38  ;;  %v1586_v15 = vadd.f32 1.0, %v2163_v25  ;;  %v1351_v43 = vmul.f32 %v1350_v58, %v3291_v20 }
 0x14d   : > { %v2165_v35 = vclamps-f32 %v782_v11, 1.0  ;;  %v809_v3 = vmul.f32 %v2406_v61, %v3325_v27  ;;  %v1196_v50 = vadd.f32 1.1283791, %v3268_v12  ;;  %v1273_v62 = vmul.f32 %v3254_v47, %v3159_v46  ;;  %v3970_v47 = vld [vmem:[#allocation17_spill] sm:$0xff] }
 0x14e   : > { %1793 = vmatmul.bf16.vlgmr.msra.gmra.mxu2 %v1645_v52  ;;  %v1313_v45 = vmul.f32 %v1312_v7, %v3187_v1  ;;  %v1465_v54 = vmul.f32 %v3344_v51, %v3344_v51  ;;  %v1235_v36 = vmul.f32 %v1234_v39, %v3128_v49  ;;  %v1390_v9 = vadd.f32 0.0036580483, %v1389_v59 }
 0x14f   : > { %v1588_v38 = vadd.f32 1.0, %v2165_v35  ;;  %v810_v34 = vsub.f32 1.0, %v809_v3  ;;  %v1428_v14 = vadd.f32 0.00028619796, %v1427_v19  ;;  %v884_v6 = vmul.f32 %v883_v26, %v2933_v28  ;;  %v3976_v3 = vld [vmem:[#allocation26_spill] sm:$0xff] }
 0x150   : > { %v842_v18 = vmul.f32 %v841_v24, %v2915_v2  ;;  %v918_v12 = vmul.f32 3.8918573e-05, %v3968_v33  ;;  %v1610_v32 = vmul.f32 %v1586_v15, %v3969_v31  ;;  %v1352_v58 = vadd.f32 0.05243302, %v1351_v43 }
 0x151   : > { %v1612_v4 = vmul.f32 %v1588_v38, %v3970_v47  ;;  %v811_v7 = vmul.f32 %v2406_v61, %v810_v34  ;;  %v1274_v25 = vadd.f32 0.18741608, %v1273_v62  ;;  %v1314_v60 = vadd.f32 0.18741608, %v1313_v45 }
 0x152   : > { %v3369_v52 = vmin.f32 %v1465_v54, 16.0  ;;  %vm814_vm0 = vweird.f32 %v2406_v61  ;;  %v1391_v11 = vmul.f32 %v1390_v9, %v3301_v57  ;;  %v819_v19 = vand.u32 2147483648, %v3325_v27 }
 0x153   : > { %v1646_v39 = vpack.c.bf16 %v1612_v4, %v1610_v32  ;;  %v812_v59 = vadd.f32 %v2406_v61, %v811_v7  ;;  %v1236_v26 = vadd.f32 1.1283791, %v1235_v36  ;;  %vm813_vm1 = vweird.f32 %v3325_v27  ;;  %v3974_v7 = vld [vmem:[#allocation22_spill] sm:$0xff] }
 0x154   : > { %v817_v24 = vand.u32 2147483647, %v3325_v27  ;;  %v885_v35 = vadd.f32 0.4994258, %v884_v6  ;;  %v1353_v15 = vmul.f32 %v1352_v58, %v3291_v20  ;;  %v1429_v43 = vmul.f32 %v1428_v14, %v3338_v8  ;;  %vm3377_vm2 = vmor %vm813_vm1, %vm814_vm0 }
 0x155   : > { %1832 = vmatmul.bf16.vlgmr.msra.gmra.mxu3 %v1646_v39  ;;  %v843_v62 = vadd.f32 0.112945676, %v842_v18  ;;  %v919_v45 = vadd.f32 0.001143296, %v918_v12  ;;  %v1275_v54 = vmul.f32 %v1274_v25, %v3159_v46  ;;  %v1467_v36 = vmul.f32 2.1237322e-06, %v3369_v52 }
 0x156   : > { %v816_v38 = vsel %vm3377_vm2, %v2406_v61, %v812_v59  ;;  %v886_v27 = vmul.f32 %v885_v35, %v2933_v28  ;;  %v1315_v9 = vmul.f32 %v1314_v60, %v3187_v1  ;;  %v1392_v34 = vadd.f32 0.05243302, %v1391_v11  ;;  %v3973_v61 = vld [vmem:[#allocation20_spill] sm:$0xff] }
 0x157   : > { %v820_v6 = vor.u32 1.1754944e-38, %v819_v19  ;;  %v844_v14 = vmul.f32 %v843_v62, %v2915_v2  ;;  %vm818_vm3 = vcmp.eq.f32.partialorder %v817_v24, 8.507059e+37  ;;  %v920_v18 = vmul.f32 %v919_v45, %v3968_v33  ;;  %v3975_v24 = vld [vmem:[#allocation24_spill] sm:$0xff] }
 0x158   : > { %v3388_v31 = vadd.f32 1.0, %v886_v27  ;;  %v958_v12 = vmul.f32 3.8918573e-05, %v2970_v63  ;;  %v1354_v32 = vadd.f32 0.18741608, %v1353_v15  ;;  %v3394_v28 = vmul.f32 %v3240_v41, %v3973_v61 }
 0x159   : > { %v1430_v47 = vadd.f32 0.0036580483, %v1429_v43  ;;  %v821_v4 = vsel %vm818_vm3, %v820_v6, %v816_v38  ;;  %v845_v58 = vadd.f32 0.4994258, %v844_v14  ;;  %v3398_v25 = vmul.f32 %v3242_v22, %v3974_v7 }
 0x15a   : > { %v1468_v60 = vadd.f32 0.00028619796, %v1467_v36  ;;  %2407 = vrcp.f32 %v3388_v31  ;;  %v1276_v39 = vadd.f32 1.1283791, %v1275_v54  ;;  %v1316_v11 = vadd.f32 1.1283791, %v1315_v9 }
 0x15b   : > { %v1393_v59 = vmul.f32 %v1392_v34, %v3301_v57  ;;  %v846_v19 = vmul.f32 %v845_v58, %v2915_v2  ;;  %v3404_v35 = vmul.f32 %v1196_v50, %v3975_v24  ;;  %v822_v15 = vmul.f32 %v821_v4, %v3122_v13 }
 0x15c   : > { %v921_v41 = vadd.f32 0.014752088, %v920_v18  ;;  %v959_v43 = vadd.f32 0.001143296, %v958_v12  ;;  %v3408_v62 = vmul.f32 %v1236_v26, %v3976_v3  ;;  %v1355_v22 = vmul.f32 %v1354_v32, %v3291_v20 }
 0x15d   : > { %v1431_v45 = vmul.f32 %v1430_v47, %v3338_v8  ;;  %v3412_v54 = vadd.f32 1.0, %v846_v19  ;;  %v1469_v36 = vmul.f32 %v1468_v60, %v3369_v52  ;;  %v1038_v38 = vmul.f32 3.8918573e-05, %v3002_v48 }
 0x15e   : > { %v922_v2 = vmul.f32 %v921_v41, %v3968_v33  ;;  %v960_v50 = vmul.f32 %v959_v43, %v2970_v63  ;;  %v3419_v13 = vmul.f32 %v1276_v39, %v3116_v29  ;;  %v3422_v26 = vmul.f32 %v1316_v11, %v3150_v53  ;;  %v535_v41 = vpop.f32.mrf.mxu0 }
 0x15f   : > { %v1394_v27 = vadd.f32 0.18741608, %v1393_v59  ;;  %2409 = vrcp.f32 %v3412_v54  ;;  %v3426_v34 = vmul.f32 0.5, %v3251_v42  ;;  %v2166_v6 = vclamps-f32 %v822_v15, 1.0 }
 0x160   : > { %v2408_v9 = vpop.eup %2407  ;;  %v923_v14 = vadd.f32 0.112945676, %v922_v2  ;;  %v961_v18 = vadd.f32 0.014752088, %v960_v50  ;;  %v3428_v12 = vadd.f32 1.1283791, %v1355_v22  ;;  %vm893_vm4 = vweird.f32 %v3388_v31 }
 0x161   : > { %v1432_v32 = vadd.f32 0.05243302, %v1431_v45  ;;  %v889_v47 = vmul.f32 %v2408_v9, %v3388_v31  ;;  %v1039_v29 = vadd.f32 0.001143296, %v1038_v38  ;;  %v3431_v4 = vadd.f32 0.0036580483, %v1469_v36 }
 0x162   : > { %v897_v53 = vand.u32 2147483647, %v3388_v31  ;;  %v924_v58 = vmul.f32 %v923_v14, %v3968_v33  ;;  %v962_v61 = vmul.f32 %v961_v18, %v2970_v63  ;;  %v3437_v42 = vmul.f32 %v1394_v27, %v3301_v57 }
 0x163   : > { %v890_v7 = vsub.f32 1.0, %v889_v47  ;;  %v899_v60 = vand.u32 2147483648, %v3388_v31  ;;  %v1040_v39 = vmul.f32 %v1039_v29, %v3002_v48  ;;  %v1589_v11 = vadd.f32 1.0, %v2166_v6  ;;  %v574_v29 = vpop.f32.mrf.mxu1 }
 0x164   : > { %v925_v59 = vadd.f32 0.4994258, %v924_v58  ;;  %v963_v19 = vadd.f32 0.112945676, %v962_v61  ;;  %vm894_vm5 = vweird.f32 %v2408_v9  ;;  %v998_v3 = vmul.f32 3.8918573e-05, %v2981_v17 }
 0x165   : > { %v2410_v24 = vpop.eup %2409  ;;  %v891_v15 = vmul.f32 %v2408_v9, %v890_v7  ;;  %v1041_v43 = vadd.f32 0.014752088, %v1040_v39  ;;  %vm3443_vm6 = vcmp.eq.f32.partialorder %v897_v53, 8.507059e+37  ;;  %v3450_v2 = vadd.f32 %v535_v41, %v2835_v55  ;;  %vm895_vm8 = vmor %vm893_vm4, %vm894_vm5 }
 0x166   : > { %v849_v45 = vmul.f32 %v2410_v24, %v3412_v54  ;;  %v926_v36 = vmul.f32 %v925_v59, %v3968_v33  ;;  %v900_v38 = vor.u32 1.1754944e-38, %v899_v60  ;;  %vm853_vm7 = vweird.f32 %v3412_v54 }
 0x167   : > { %v892_v50 = vadd.f32 %v2408_v9, %v891_v15  ;;  %v964_v27 = vmul.f32 %v963_v19, %v2970_v63  ;;  %v3459_v18 = vmul.f32 0.70710677, %v3450_v2  ;;  %v1042_v33 = vmul.f32 %v1041_v43, %v3002_v48 }
 0x168   : > { %v850_v6 = vsub.f32 1.0, %v849_v45  ;;  %v3456_v14 = vadd.f32 1.0, %v926_v36  ;;  %v857_v55 = vand.u32 2147483647, %v3412_v54  ;;  %v999_v58 = vadd.f32 0.001143296, %v998_v3 }
 0x169   : > { %v896_v47 = vsel %vm895_vm8, %v2408_v9, %v892_v50  ;;  %v965_v53 = vadd.f32 0.4994258, %v964_v27  ;;  %vm854_vm9 = vweird.f32 %v2410_v24  ;;  %v859_v60 = vand.u32 2147483648, %v3412_v54  ;;  %v3981_v36 = vld [vmem:[#allocation18_spill] sm:$0xff] }
 0x16a   : > { %v901_v61 = vsel %vm3443_vm6, %v900_v38, %v896_v47  ;;  %v851_v7 = vmul.f32 %v2410_v24, %v850_v6  ;;  %2411 = vrcp.f32 %v3456_v14  ;;  %v1505_v39 = vmul.f32 %v3459_v18, %v3459_v18  ;;  %vm3480_vm10 = vmor %vm853_vm7, %vm854_vm9 }
 0x16b   : > { %v902_v31 = vmul.f32 %v901_v61, %v3153_v0  ;;  %v1078_v9 = vmul.f32 3.8918573e-05, %v3021_v23  ;;  %v3472_v19 = vadd.f32 %v574_v29, %v2837_v56  ;;  %v966_v15 = vmul.f32 %v965_v53, %v2970_v63  ;;  %v3982_v29 = vld [vmem:[#allocation21_spill] sm:$0xff] }
 0x16c   : > { %v852_v59 = vadd.f32 %v2410_v24, %v851_v7  ;;  %v1043_v41 = vadd.f32 0.112945676, %v1042_v33  ;;  %v3476_v43 = vmul.f32 %v1432_v32, %v3338_v8  ;;  %v3484_v22 = vmin.f32 %v1505_v39, 16.0 }
 0x16d   : > { %v2168_v3 = vclamps-f32 %v902_v31, 1.0  ;;  %v1000_v45 = vmul.f32 %v999_v58, %v2981_v17  ;;  %v1613_v56 = vmul.f32 %v1589_v11, %v3981_v36  ;;  %v3490_v50 = vadd.f32 1.0, %v966_v15 }
 0x16e   : > { %v856_v63 = vsel %vm3480_vm10, %v2410_v24, %v852_v59  ;;  %v1118_v32 = vmul.f32 3.8918573e-05, %v3046_v30  ;;  %v860_v27 = vor.u32 1.1754944e-38, %v859_v60  ;;  %v1507_v54 = vmul.f32 2.1237322e-06, %v3484_v22 }
 0x16f   : > { %v1591_v38 = vadd.f32 1.0, %v2168_v3  ;;  %v1044_v6 = vmul.f32 %v1043_v41, %v3002_v48  ;;  %vm858_vm11 = vcmp.eq.f32.partialorder %v857_v55, 8.507059e+37  ;;  %v3496_v47 = vmul.f32 0.70710677, %v3472_v19 }
 0x170   : > { %v2412_v33 = vpop.eup %2411  ;;  %2413 = vrcp.f32 %v3490_v50  ;;  %v1079_v11 = vadd.f32 0.001143296, %v1078_v9  ;;  %v861_v53 = vsel %vm858_vm11, %v860_v27, %v856_v63  ;;  %v1001_v61 = vadd.f32 0.014752088, %v1000_v45 }
 0x171   : > { %v1615_v24 = vmul.f32 %v1591_v38, %v3982_v29  ;;  %v929_v58 = vmul.f32 %v2412_v33, %v3456_v14  ;;  %v3503_v7 = vmul.f32 %v3428_v12, %v3265_v21  ;;  %v937_v31 = vand.u32 2147483647, %v3456_v14 }
 0x172   : > { %v1508_v60 = vadd.f32 0.00028619796, %v1507_v54  ;;  %v1119_v55 = vadd.f32 0.001143296, %v1118_v32  ;;  %v939_v15 = vand.u32 2147483648, %v3456_v14  ;;  %v3512_v3 = vmul.f32 %v3431_v4, %v3369_v52 }
 0x173   : > { %v1647_v39 = vpack.c.bf16 %v1615_v24, %v1613_v56  ;;  %v930_v59 = vsub.f32 1.0, %v929_v58  ;;  %v1045_v41 = vadd.f32 0.4994258, %v1044_v6  ;;  %v3508_v9 = vadd.f32 1.1283791, %v3437_v42 }
 0x174   : > { %v862_v0 = vmul.f32 %v861_v53, %v3136_v10  ;;  %v1545_v21 = vmul.f32 %v3496_v47, %v3496_v47  ;;  %vm934_vm12 = vweird.f32 %v2412_v33  ;;  %v1002_v36 = vmul.f32 %v1001_v61, %v2981_v17 }
 0x175   : > { %1798 = vmatmul.bf16.gmra.mxu2 %v1647_v39  ;;  %v931_v12 = vmul.f32 %v2412_v33, %v930_v59  ;;  %v1046_v45 = vmul.f32 %v1045_v41, %v3002_v48  ;;  %vm933_vm13 = vweird.f32 %v3456_v14  ;;  %v1509_v42 = vmul.f32 %v1508_v60, %v3484_v22 }
 0x176   : > { %v2414_v56 = vpop.eup %2413  ;;  %v1080_v4 = vmul.f32 %v1079_v11, %v3021_v23  ;;  %v1120_v63 = vmul.f32 %v1119_v55, %v3046_v30  ;;  %vm938_vm14 = vcmp.eq.f32.partialorder %v937_v31, 8.507059e+37  ;;  %v940_v32 = vor.u32 1.1754944e-38, %v939_v15  ;;  %vm935_vm15 = vmor %vm933_vm13, %vm934_vm12 }
 0x177   : > { %v932_v10 = vadd.f32 %v2412_v33, %v931_v12  ;;  %v969_v38 = vmul.f32 %v2414_v56, %v3490_v50  ;;  %v3524_v27 = vmin.f32 %v1545_v21, 16.0  ;;  %v3526_v48 = vadd.f32 1.0, %v1046_v45 }
 0x178   : > { %v1003_v54 = vadd.f32 0.112945676, %v1002_v36  ;;  %v1081_v6 = vadd.f32 0.014752088, %v1080_v4  ;;  %v2167_v29 = vclamps-f32 %v862_v0, 1.0  ;;  %v979_v53 = vand.u32 2147483648, %v3490_v50 }
 0x179   : > { %v936_v14 = vsel %vm935_vm15, %v2412_v33, %v932_v10  ;;  %v970_v24 = vsub.f32 1.0, %v969_v38  ;;  %v1510_v58 = vadd.f32 0.0036580483, %v1509_v42  ;;  %2415 = vrcp.f32 %v3526_v48 }
 0x17a   : > { %v941_v11 = vsel %vm938_vm14, %v940_v32, %v936_v14  ;;  %v1121_v61 = vadd.f32 0.014752088, %v1120_v63  ;;  %vm974_vm0 = vweird.f32 %v2414_v56  ;;  %v977_v55 = vand.u32 2147483647, %v3490_v50 }
 0x17b   : > { %v942_v31 = vmul.f32 %v941_v11, %v3156_v16  ;;  %v971_v60 = vmul.f32 %v2414_v56, %v970_v24  ;;  %v3533_v39 = vadd.f32 0.18741608, %v3476_v43  ;;  %v1547_v59 = vmul.f32 2.1237322e-06, %v3524_v27  ;;  %v3985_v24 = vld [vmem:[#allocation34_spill] sm:$0xff] }
 0x17c   : > { %v1004_v33 = vmul.f32 %v1003_v54, %v2981_v17  ;;  %v1082_v15 = vmul.f32 %v1081_v6, %v3021_v23  ;;  %v1590_v0 = vadd.f32 1.0, %v2167_v29  ;;  %vm973_vm1 = vweird.f32 %v3490_v50  ;;  %v3983_v6 = vld [vmem:[#allocation19_spill] sm:$0xff] }
 0x17d   : > { %v2169_v41 = vclamps-f32 %v942_v31, 1.0  ;;  %v972_v21 = vadd.f32 %v2414_v56, %v971_v60  ;;  %v1511_v16 = vmul.f32 %v1510_v58, %v3484_v22  ;;  %vm975_vm2 = vmor %vm973_vm1, %vm974_vm0  ;;  %v980_v12 = vor.u32 1.1754944e-38, %v979_v53  ;;  %v3984_v29 = vld [vmem:[#allocation23_spill] sm:$0xff] }
 0x17e   : > { %v1005_v45 = vadd.f32 0.4994258, %v1004_v33  ;;  %v1122_v36 = vmul.f32 %v1121_v61, %v3046_v30  ;;  %vm978_vm3 = vcmp.eq.f32.partialorder %v977_v55, 8.507059e+37  ;;  %v1083_v4 = vadd.f32 0.112945676, %v1082_v15 }
 0x17f   : > { %v1592_v43 = vadd.f32 1.0, %v2169_v41  ;;  %v976_v42 = vsel %vm975_vm2, %v2414_v56, %v972_v21  ;;  %v2416_v63 = vpop.eup %2415  ;;  %v1548_v10 = vadd.f32 0.00028619796, %v1547_v59  ;;  %v1158_v54 = vmul.f32 3.8918573e-05, %v3060_v37 }
 0x180   : > { %v981_v32 = vsel %vm978_vm3, %v980_v12, %v976_v42  ;;  %v1006_v38 = vmul.f32 %v1005_v45, %v2981_v17  ;;  %v1614_v50 = vmul.f32 %v1590_v0, %v3983_v6  ;;  %v1049_v11 = vmul.f32 %v2416_v63, %v3526_v48  ;;  %v3986_v45 = vld [vmem:[#allocation28_spill] sm:$0xff] }
 0x181   : > { %v1616_v14 = vmul.f32 %v1592_v43, %v3984_v29  ;;  %v982_v53 = vmul.f32 %v981_v32, %v3985_v24  ;;  %v1512_v58 = vadd.f32 0.05243302, %v1511_v16  ;;  %v1084_v56 = vmul.f32 %v1083_v4, %v3021_v23 }
 0x182   : > { %v3547_v61 = vadd.f32 1.0, %v1006_v38  ;;  %v1123_v31 = vadd.f32 0.112945676, %v1122_v36  ;;  %v1050_v55 = vsub.f32 1.0, %v1049_v11  ;;  %v1057_v17 = vand.u32 2147483647, %v3526_v48 }
 0x183   : > { %v1648_v60 = vpack.c.bf16 %v1616_v14, %v1614_v50  ;;  %v1059_v59 = vand.u32 2147483648, %v3526_v48  ;;  %v3553_v33 = vadd.f32 0.05243302, %v3512_v3  ;;  %v3556_v15 = vmul.f32 %v1548_v10, %v3524_v27  ;;  %v3987_v11 = vld [vmem:[#allocation39_spill] sm:$0xff] }
 0x184   : > { %vm1053_vm4 = vweird.f32 %v3526_v48  ;;  %2417 = vrcp.f32 %v3547_v61  ;;  %v2170_v41 = vclamps-f32 %v982_v53, 1.0  ;;  %v1051_v0 = vmul.f32 %v2416_v63, %v1050_v55 }
 0x185   : > { %1837 = vmatmul.bf16.gmra.mxu3 %v1648_v60  ;;  %vm1054_vm5 = vweird.f32 %v2416_v63  ;;  %v1085_v21 = vadd.f32 0.4994258, %v1084_v56  ;;  %v3561_v16 = vmul.f32 %v1512_v58, %v3484_v22  ;;  %v1124_v12 = vmul.f32 %v1123_v31, %v3046_v30 }
 0x186   : > { %v1198_v3 = vmul.f32 3.8918573e-05, %v3986_v45  ;;  %v1159_v36 = vadd.f32 0.001143296, %v1158_v54  ;;  %v1052_v43 = vadd.f32 %v2416_v63, %v1051_v0  ;;  %vm1058_vm6 = vcmp.eq.f32.partialorder %v1057_v17, 8.507059e+37  ;;  %vm1055_vm7 = vmor %vm1053_vm4, %vm1054_vm5 }
 0x187   : > { %v1060_v42 = vor.u32 1.1754944e-38, %v1059_v59  ;;  %v1086_v4 = vmul.f32 %v1085_v21, %v3021_v23  ;;  %v1017_v10 = vand.u32 2147483647, %v3547_v61  ;;  %v1125_v32 = vadd.f32 0.4994258, %v1124_v12  ;;  %v3990_v21 = vld [vmem:[#allocation25_spill] sm:$0xff] }
 0x188   : > { %v1199_v38 = vadd.f32 0.001143296, %v1198_v3  ;;  %v1160_v6 = vmul.f32 %v1159_v36, %v3060_v37  ;;  %v1056_v50 = vsel %vm1055_vm7, %v2416_v63, %v1052_v43  ;;  %v1593_v29 = vadd.f32 1.0, %v2170_v41 }
 0x189   : > { %vm1013_vm8 = vweird.f32 %v3547_v61  ;;  %v3571_v14 = vadd.f32 1.0, %v1086_v4  ;;  %v1061_v24 = vsel %vm1058_vm6, %v1060_v42, %v1056_v50  ;;  %v1126_v53 = vmul.f32 %v1125_v32, %v3046_v30 }
 0x18a   : > { %v2418_v54 = vpop.eup %2417  ;;  %v1200_v23 = vmul.f32 %v1199_v38, %v3986_v45  ;;  %v1161_v48 = vadd.f32 0.014752088, %v1160_v6  ;;  %v1062_v58 = vmul.f32 %v1061_v24, %v3987_v11  ;;  %v1019_v31 = vand.u32 2147483648, %v3547_v61  ;;  %v3991_v24 = vld [vmem:[#allocation29_spill] sm:$0xff] }
 0x18b   : > { %v1009_v56 = vmul.f32 %v2418_v54, %v3547_v61  ;;  %2419 = vrcp.f32 %v3571_v14  ;;  %vm3579_vm9 = vcmp.eq.f32.partialorder %v1017_v10, 8.507059e+37  ;;  %v3583_v60 = vadd.f32 1.0, %v1126_v53 }
 0x18c   : > { %v1238_v55 = vmul.f32 3.8918573e-05, %v3128_v49  ;;  %v1278_v30 = vmul.f32 3.8918573e-05, %v3159_v46  ;;  %v2172_v17 = vclamps-f32 %v1062_v58, 1.0  ;;  %v1162_v0 = vmul.f32 %v1161_v48, %v3060_v37 }
 0x18d   : > { %v1010_v59 = vsub.f32 1.0, %v1009_v56  ;;  %v1201_v41 = vadd.f32 0.014752088, %v1200_v23  ;;  %v1617_v12 = vmul.f32 %v1593_v29, %v3990_v21  ;;  %v1097_v3 = vand.u32 2147483647, %v3571_v14 }
 0x18e   : > { %v1099_v36 = vand.u32 2147483648, %v3571_v14  ;;  %2421 = vrcp.f32 %v3583_v60  ;;  %v1595_v43 = vadd.f32 1.0, %v2172_v17  ;;  %vm1014_vm10 = vweird.f32 %v2418_v54 }
 0x18f   : > { %v1011_v42 = vmul.f32 %v2418_v54, %v1010_v59  ;;  %v1020_v4 = vor.u32 1.1754944e-38, %v1019_v31  ;;  %v1202_v10 = vmul.f32 %v1201_v41, %v3986_v45  ;;  %v1163_v32 = vadd.f32 0.112945676, %v1162_v0  ;;  %vm1015_vm12 = vmor %vm1013_vm8, %vm1014_vm10 }
 0x190   : > { %v1239_v38 = vadd.f32 0.001143296, %v1238_v55  ;;  %v1279_v6 = vadd.f32 0.001143296, %v1278_v30  ;;  %v1619_v53 = vmul.f32 %v1595_v43, %v3991_v24  ;;  %vm1093_vm11 = vweird.f32 %v3571_v14  ;;  %v3994_v43 = vld [vmem:[#allocation36_spill] sm:$0xff] }
 0x191   : > { %v2420_v50 = vpop.eup %2419  ;;  %v1012_v23 = vadd.f32 %v2418_v54, %v1011_v42  ;;  %v1358_v29 = vmul.f32 3.8918573e-05, %v3291_v20  ;;  %vm3599_vm13 = vcmp.eq.f32.partialorder %v1097_v3, 8.507059e+37  ;;  %v1100_v58 = vor.u32 1.1754944e-38, %v1099_v36 }
 0x192   : > { %v1089_v48 = vmul.f32 %v2420_v50, %v3571_v14  ;;  %v1203_v56 = vadd.f32 0.112945676, %v1202_v10  ;;  %v1164_v31 = vmul.f32 %v1163_v32, %v3060_v37  ;;  %v1649_v55 = vpack.c.bf16 %v1619_v53, %v1617_v12 }
 0x193   : > { %v1016_v30 = vsel %vm1015_vm12, %v2418_v54, %v1012_v23  ;;  %v1240_v17 = vmul.f32 %v1239_v38, %v3128_v49  ;;  %v1280_v59 = vmul.f32 %v1279_v6, %v3159_v46  ;;  %v1139_v12 = vand.u32 2147483648, %v3583_v60 }
 0x194   : > { %v2422_v41 = vpop.eup %2421  ;;  %v1021_v61 = vsel %vm3579_vm9, %v1020_v4, %v1016_v30  ;;  %v1090_v0 = vsub.f32 1.0, %v1089_v48  ;;  %v1204_v21 = vmul.f32 %v1203_v56, %v3986_v45  ;;  %v1165_v3 = vadd.f32 0.4994258, %v1164_v31  ;;  %1803 = vmatmul.bf16.gmra.mxu2 %v1649_v55 }
 0x195   : > { %v1022_v36 = vmul.f32 %v1021_v61, %v3994_v43  ;;  %v1129_v42 = vmul.f32 %v2422_v41, %v3583_v60  ;;  %v1241_v54 = vadd.f32 0.014752088, %v1240_v17  ;;  %vm1094_vm14 = vweird.f32 %v2420_v50 }
 0x196   : > { %v1091_v10 = vmul.f32 %v2420_v50, %v1090_v0  ;;  %v1205_v32 = vadd.f32 0.4994258, %v1204_v21  ;;  %v1166_v38 = vmul.f32 %v1165_v3, %v3060_v37  ;;  %v1281_v24 = vadd.f32 0.014752088, %v1280_v59  ;;  %vm1095_vm15 = vmor %vm1093_vm11, %vm1094_vm14 }
 0x197   : > { %v2171_v6 = vclamps-f32 %v1022_v36, 1.0  ;;  %v1130_v63 = vsub.f32 1.0, %v1129_v42  ;;  %v1242_v4 = vmul.f32 %v1241_v54, %v3128_v49  ;;  %v1359_v56 = vadd.f32 0.001143296, %v1358_v29 }
 0x198   : > { %v1092_v53 = vadd.f32 %v2420_v50, %v1091_v10  ;;  %v1206_v23 = vmul.f32 %v1205_v32, %v3986_v45  ;;  %v3615_v48 = vadd.f32 1.0, %v1166_v38  ;;  %vm1133_vm0 = vweird.f32 %v3583_v60 }
 0x199   : > { %v1131_v31 = vmul.f32 %v2422_v41, %v1130_v63  ;;  %vm1134_vm1 = vweird.f32 %v2422_v41  ;;  %v1137_v37 = vand.u32 2147483647, %v3583_v60  ;;  %v1243_v17 = vadd.f32 0.112945676, %v1242_v4  ;;  %v3996_v4 = vld [vmem:[#allocation30_spill] sm:$0xff] }
 0x19a   : > { %v1096_v55 = vsel %vm1095_vm15, %v2420_v50, %v1092_v53  ;;  %v3621_v30 = vadd.f32 1.0, %v1206_v23  ;;  %2423 = vrcp.f32 %v3615_v48  ;;  %v1140_v29 = vor.u32 1.1754944e-38, %v1139_v12  ;;  %vm1135_vm2 = vmor %vm1133_vm0, %vm1134_vm1 }
 0x19b   : > { %v1101_v45 = vsel %vm3599_vm13, %v1100_v58, %v1096_v55  ;;  %v1132_v59 = vadd.f32 %v2422_v41, %v1131_v31  ;;  %v1282_v14 = vmul.f32 %v1281_v24, %v3159_v46  ;;  %v1594_v0 = vadd.f32 1.0, %v2171_v6 }
 0x19c   : > { %v1102_v61 = vmul.f32 %v1101_v45, %v3352_v40  ;;  %2425 = vrcp.f32 %v3621_v30  ;;  %v1360_v60 = vmul.f32 %v1359_v56, %v3291_v20  ;;  %v3632_v50 = vmul.f32 %v3533_v39, %v3338_v8 }
 0x19d   : > { %v3635_v21 = vadd.f32 0.0036580483, %v3556_v15  ;;  %v1136_v11 = vsel %vm1135_vm2, %v2422_v41, %v1132_v59  ;;  %vm1138_vm3 = vcmp.eq.f32.partialorder %v1137_v37, 8.507059e+37  ;;  %v3638_v58 = vadd.f32 0.18741608, %v3561_v16  ;;  %v3995_v15 = vld [vmem:[#allocation27_spill] sm:$0xff] }
 0x19e   : > { %v2173_v3 = vclamps-f32 %v1102_v61, 1.0  ;;  %v1141_v40 = vsel %vm1138_vm3, %v1140_v29, %v1136_v11  ;;  %v1244_v43 = vmul.f32 %v1243_v17, %v3128_v49  ;;  %vm1173_vm4 = vweird.f32 %v3615_v48 }
 0x19f   : > { %v1142_v36 = vmul.f32 %v1141_v40, %v3394_v28  ;;  %v1177_v42 = vand.u32 2147483647, %v3615_v48  ;;  %v1283_v39 = vadd.f32 0.112945676, %v1282_v14  ;;  %v1618_v10 = vmul.f32 %v1594_v0, %v3995_v15 }
 0x1a0   : > { %v2424_v12 = vpop.eup %2423  ;;  %v1596_v54 = vadd.f32 1.0, %v2173_v3  ;;  %v1245_v41 = vadd.f32 0.4994258, %v1244_v43  ;;  %v1361_v32 = vadd.f32 0.014752088, %v1360_v60  ;;  %vm1213_vm5 = vweird.f32 %v3621_v30 }
 0x1a1   : > { %v1217_v16 = vand.u32 2147483647, %v3621_v30  ;;  %v1219_v38 = vand.u32 2147483648, %v3621_v30  ;;  %v1169_v6 = vmul.f32 %v2424_v12, %v3615_v48  ;;  %v1284_v28 = vmul.f32 %v1283_v39, %v3159_v46 }
 0x1a2   : > { %v2426_v63 = vpop.eup %2425  ;;  %v1620_v24 = vmul.f32 %v1596_v54, %v3996_v4  ;;  %v1246_v53 = vmul.f32 %v1245_v41, %v3128_v49  ;;  %v1362_v23 = vmul.f32 %v1361_v32, %v3291_v20  ;;  %v1318_v56 = vmul.f32 3.8918573e-05, %v3187_v1 }
 0x1a3   : > { %v2174_v31 = vclamps-f32 %v1142_v36, 1.0  ;;  %v1209_v37 = vmul.f32 %v2426_v63, %v3621_v30  ;;  %v1170_v55 = vsub.f32 1.0, %v1169_v6  ;;  %v1179_v17 = vand.u32 2147483648, %v3615_v48 }
 0x1a4   : > { %v1650_v45 = vpack.c.bf16 %v1620_v24, %v1618_v10  ;;  %v3656_v59 = vadd.f32 1.0, %v1246_v53  ;;  %v1285_v29 = vadd.f32 0.4994258, %v1284_v28  ;;  %v1363_v14 = vadd.f32 0.112945676, %v1362_v23 }
 0x1a5   : > { %v1210_v61 = vsub.f32 1.0, %v1209_v37  ;;  %v1171_v0 = vmul.f32 %v2424_v12, %v1170_v55  ;;  %vm1174_vm6 = vweird.f32 %v2424_v12  ;;  %v1319_v60 = vadd.f32 0.001143296, %v1318_v56  ;;  %v4001_v56 = vld [vmem:[#allocation31_spill] sm:$0xff] }
 0x1a6   : > { %1842 = vmatmul.bf16.gmra.mxu3 %v1650_v45  ;;  %vm1214_vm7 = vweird.f32 %v2426_v63  ;;  %vm3658_vm8 = vcmp.eq.f32.partialorder %v1217_v16, 8.507059e+37  ;;  %vm3662_vm9 = vcmp.eq.f32.partialorder %v1177_v42, 8.507059e+37  ;;  %2427 = vrcp.f32 %v3656_v59  ;;  %vm1175_vm10 = vmor %vm1173_vm4, %vm1174_vm6 }
 0x1a7   : > { %v1211_v3 = vmul.f32 %v2426_v63, %v1210_v61  ;;  %v1172_v40 = vadd.f32 %v2424_v12, %v1171_v0  ;;  %v1286_v43 = vmul.f32 %v1285_v29, %v3159_v46  ;;  %v1364_v36 = vmul.f32 %v1363_v14, %v3291_v20  ;;  %vm1215_vm11 = vmor %vm1213_vm5, %vm1214_vm7 }
 0x1a8   : > { %v1597_v39 = vadd.f32 1.0, %v2174_v31  ;;  %v1180_v54 = vor.u32 1.1754944e-38, %v1179_v17  ;;  %v1320_v15 = vmul.f32 %v1319_v60, %v3187_v1  ;;  %v1398_v42 = vmul.f32 3.8918573e-05, %v3301_v57 }
 0x1a9   : > { %v1212_v10 = vadd.f32 %v2426_v63, %v1211_v3  ;;  %v1176_v41 = vsel %vm1175_vm10, %v2424_v12, %v1172_v40  ;;  %v3673_v32 = vadd.f32 1.0, %v1286_v43  ;;  %v1365_v16 = vadd.f32 0.4994258, %v1364_v36 }
 0x1aa   : > { %v1220_v46 = vor.u32 1.1754944e-38, %v1219_v38  ;;  %v1181_v6 = vsel %vm3662_vm9, %v1180_v54, %v1176_v41  ;;  %v1257_v48 = vand.u32 2147483647, %v3656_v59  ;;  %v1321_v28 = vadd.f32 0.014752088, %v1320_v15 }
 0x1ab   : > { %v1216_v4 = vsel %vm1215_vm11, %v2426_v63, %v1212_v10  ;;  %v1182_v24 = vmul.f32 %v1181_v6, %v3398_v25  ;;  %2429 = vrcp.f32 %v3673_v32  ;;  %v1399_v12 = vadd.f32 0.001143296, %v1398_v42  ;;  %v4006_v42 = vld [vmem:[#allocation33_spill] sm:$0xff] }
 0x1ac   : > { %v2428_v53 = vpop.eup %2427  ;;  %v1221_v23 = vsel %vm3658_vm8, %v1220_v46, %v1216_v4  ;;  %v1621_v30 = vmul.f32 %v1597_v39, %v4001_v56  ;;  %v1259_v38 = vand.u32 2147483648, %v3656_v59  ;;  %v1366_v31 = vmul.f32 %v1365_v16, %v3291_v20 }
 0x1ad   : > { %v1222_v37 = vmul.f32 %v1221_v23, %v3404_v35  ;;  %v1249_v55 = vmul.f32 %v2428_v53, %v3656_v59  ;;  %vm1253_vm12 = vweird.f32 %v3656_v59  ;;  %v1297_v25 = vand.u32 2147483647, %v3673_v32 }
 0x1ae   : > { %v2175_v63 = vclamps-f32 %v1182_v24, 1.0  ;;  %v1299_v17 = vand.u32 2147483648, %v3673_v32  ;;  %v3693_v45 = vadd.f32 1.0, %v1366_v31  ;;  %v1322_v29 = vmul.f32 %v1321_v28, %v3187_v1 }
 0x1af   : > { %v2176_v14 = vclamps-f32 %v1222_v37, 1.0  ;;  %v1250_v61 = vsub.f32 1.0, %v1249_v55  ;;  %vm3696_vm13 = vcmp.eq.f32.partialorder %v1257_v48, 8.507059e+37  ;;  %v1400_v20 = vmul.f32 %v1399_v12, %v3301_v57 }
 0x1b0   : > { %v1260_v35 = vor.u32 1.1754944e-38, %v1259_v38  ;;  %vm1293_vm14 = vweird.f32 %v3673_v32  ;;  %2431 = vrcp.f32 %v3693_v45  ;;  %v1438_v60 = vmul.f32 3.8918573e-05, %v3338_v8 }
 0x1b1   : > { %v2430_v49 = vpop.eup %2429  ;;  %v1599_v11 = vadd.f32 1.0, %v2176_v14  ;;  %v1251_v3 = vmul.f32 %v2428_v53, %v1250_v61  ;;  %vm1254_vm15 = vweird.f32 %v2428_v53  ;;  %v1323_v40 = vadd.f32 0.112945676, %v1322_v29 }
 0x1b2   : > { %v1598_v43 = vadd.f32 1.0, %v2175_v63  ;;  %v1289_v36 = vmul.f32 %v2430_v49, %v3673_v32  ;;  %vm3705_vm0 = vcmp.eq.f32.partialorder %v1297_v25, 8.507059e+37  ;;  %v1300_v54 = vor.u32 1.1754944e-38, %v1299_v17  ;;  %vm1255_vm1 = vmor %vm1253_vm12, %vm1254_vm15 }
 0x1b3   : > { %v1377_v15 = vand.u32 2147483647, %v3693_v45  ;;  %v1623_v10 = vmul.f32 %v1599_v11, %v4006_v42  ;;  %v1252_v41 = vadd.f32 %v2428_v53, %v1251_v3  ;;  %v1324_v16 = vmul.f32 %v1323_v40, %v3187_v1 }
 0x1b4   : > { %v1401_v46 = vadd.f32 0.014752088, %v1400_v20  ;;  %v1290_v6 = vsub.f32 1.0, %v1289_v36  ;;  %vm1294_vm2 = vweird.f32 %v2430_v49  ;;  %v1439_v48 = vadd.f32 0.001143296, %v1438_v60  ;;  %v4007_v36 = vld [vmem:[#allocation32_spill] sm:$0xff] }
 0x1b5   : > { %v1518_v28 = vmul.f32 3.8918573e-05, %v3484_v22  ;;  %v1651_v4 = vpack.c.bf16 %v1623_v10, %v1621_v30  ;;  %v1256_v24 = vsel %vm1255_vm1, %v2428_v53, %v1252_v41  ;;  %v1325_v12 = vadd.f32 0.4994258, %v1324_v16  ;;  %vm1295_vm3 = vmor %vm1293_vm14, %vm1294_vm2  ;;  %v4008_v10 = vld [vmem:[#allocation35_spill] sm:$0xff] }
 0x1b6   : > { %v1402_v23 = vmul.f32 %v1401_v46, %v3301_v57  ;;  %v2432_v56 = vpop.eup %2431  ;;  %v1261_v38 = vsel %vm3696_vm13, %v1260_v35, %v1256_v24  ;;  %v1291_v31 = vmul.f32 %v2430_v49, %v1290_v6  ;;  %v1440_v37 = vmul.f32 %v1439_v48, %v3338_v8 }
 0x1b7   : > { %v1519_v55 = vadd.f32 0.001143296, %v1518_v28  ;;  %1808 = vmatmul.bf16.gmra.mxu2 %v1651_v4  ;;  %v1262_v59 = vmul.f32 %v1261_v38, %v3408_v62  ;;  %v1369_v25 = vmul.f32 %v2432_v56, %v3693_v45  ;;  %v1379_v63 = vand.u32 2147483648, %v3693_v45 }
 0x1b8   : > { %v1326_v53 = vmul.f32 %v1325_v12, %v3187_v1  ;;  %v1292_v30 = vadd.f32 %v2430_v49, %v1291_v31  ;;  %v1403_v17 = vadd.f32 0.112945676, %v1402_v23  ;;  %v1441_v29 = vadd.f32 0.014752088, %v1440_v37 }
 0x1b9   : > { %v1520_v14 = vmul.f32 %v1519_v55, %v3484_v22  ;;  %v2177_v61 = vclamps-f32 %v1262_v59, 1.0  ;;  %v1370_v0 = vsub.f32 1.0, %v1369_v25  ;;  %vm1374_vm4 = vweird.f32 %v2432_v56 }
 0x1ba   : > { %v3727_v20 = vadd.f32 1.0, %v1326_v53  ;;  %v1296_v62 = vsel %vm1295_vm3, %v2430_v49, %v1292_v30  ;;  %v1404_v35 = vmul.f32 %v1403_v17, %v3301_v57  ;;  %v1442_v60 = vmul.f32 %v1441_v29, %v3338_v8 }
 0x1bb   : > { %v1521_v1 = vadd.f32 0.014752088, %v1520_v14  ;;  %v1600_v11 = vadd.f32 1.0, %v2177_v61  ;;  %v1301_v3 = vsel %vm3705_vm0, %v1300_v54, %v1296_v62  ;;  %v1371_v40 = vmul.f32 %v2432_v56, %v1370_v0 }
 0x1bc   : > { %2433 = vrcp.f32 %v3727_v20  ;;  %v1622_v32 = vmul.f32 %v1598_v43, %v4007_v36  ;;  %v1302_v42 = vmul.f32 %v1301_v3, %v3419_v13  ;;  %vm1373_vm5 = vweird.f32 %v3693_v45 }
 0x1bd   : > { %v1478_v49 = vmul.f32 3.8918573e-05, %v3369_v52  ;;  %v1624_v41 = vmul.f32 %v1600_v11, %v4008_v10  ;;  %v1372_v16 = vadd.f32 %v2432_v56, %v1371_v40  ;;  %v1405_v46 = vadd.f32 0.4994258, %v1404_v35  ;;  %vm1375_vm6 = vmor %vm1373_vm5, %vm1374_vm4  ;;  %v4010_v10 = vld [vmem:[#allocation40_spill] sm:$0xff] }
 0x1be   : > { %v1443_v6 = vadd.f32 0.112945676, %v1442_v60  ;;  %v2178_v48 = vclamps-f32 %v1302_v42, 1.0  ;;  %vm1378_vm7 = vcmp.eq.f32.partialorder %v1377_v15, 8.507059e+37  ;;  %v1380_v39 = vor.u32 1.1754944e-38, %v1379_v63  ;;  %v4009_v60 = vld [vmem:[#allocation37_spill] sm:$0xff] }
 0x1bf   : > { %v1522_v54 = vmul.f32 %v1521_v1, %v3484_v22  ;;  %v1652_v28 = vpack.c.bf16 %v1624_v41, %v1622_v32  ;;  %v1376_v43 = vsel %vm1375_vm6, %v2432_v56, %v1372_v16  ;;  %v1406_v13 = vmul.f32 %v1405_v46, %v3301_v57 }
 0x1c0   : > { %v1444_v45 = vmul.f32 %v1443_v6, %v3338_v8  ;;  %v1473_v4 = vmul.f32 %v3553_v33, %v3369_v52  ;;  %v1381_v24 = vsel %vm1378_vm7, %v1380_v39, %v1376_v43  ;;  %v1479_v23 = vadd.f32 0.001143296, %v1478_v49 }
 0x1c1   : > { %v1523_v12 = vadd.f32 0.112945676, %v1522_v54  ;;  %1847 = vmatmul.bf16.gmra.mxu3 %v1652_v28  ;;  %v1382_v31 = vmul.f32 %v1381_v24, %v3503_v7  ;;  %v3746_v15 = vadd.f32 1.0, %v1406_v13  ;;  %v1558_v55 = vmul.f32 3.8918573e-05, %v3524_v27 }
 0x1c2   : > { %v2434_v38 = vpop.eup %2433  ;;  %v1445_v37 = vadd.f32 0.4994258, %v1444_v45  ;;  %v1436_v56 = vadd.f32 1.1283791, %v3632_v50  ;;  %v1551_v57 = vmul.f32 %v3635_v21, %v3524_v27  ;;  %v1515_v25 = vmul.f32 %v3638_v58, %v3484_v22 }
 0x1c3   : > { %v1329_v59 = vmul.f32 %v2434_v38, %v3727_v20  ;;  %v1524_v33 = vmul.f32 %v1523_v12, %v3484_v22  ;;  %v2180_v63 = vclamps-f32 %v1382_v31, 1.0  ;;  %v1601_v53 = vadd.f32 1.0, %v2178_v48 }
 0x1c4   : > { %2435 = vrcp.f32 %v3746_v15  ;;  %v1339_v30 = vand.u32 2147483648, %v3727_v20  ;;  %v1446_v17 = vmul.f32 %v1445_v37, %v3338_v8  ;;  %v1337_v21 = vand.u32 2147483647, %v3727_v20 }
 0x1c5   : > { %v1330_v7 = vsub.f32 1.0, %v1329_v59  ;;  %v1525_v50 = vadd.f32 0.4994258, %v1524_v33  ;;  %v1603_v29 = vadd.f32 1.0, %v2180_v63  ;;  %v1480_v14 = vmul.f32 %v1479_v23, %v3369_v52 }
 0x1c6   : > { %v1559_v61 = vadd.f32 0.001143296, %v1558_v55  ;;  %vm1334_vm8 = vweird.f32 %v2434_v38  ;;  %v3761_v62 = vadd.f32 1.0, %v1446_v17  ;;  %v1516_v35 = vadd.f32 1.1283791, %v1515_v25 }
 0x1c7   : > { %v1331_v0 = vmul.f32 %v2434_v38, %v1330_v7  ;;  %v1526_v58 = vmul.f32 %v1525_v50, %v3484_v22  ;;  %v1625_v1 = vmul.f32 %v1601_v53, %v4009_v60  ;;  %v1627_v11 = vmul.f32 %v1603_v29, %v3426_v34 }
 0x1c8   : > { %v1481_v3 = vadd.f32 0.014752088, %v1480_v14  ;;  %vm1333_vm9 = vweird.f32 %v3727_v20  ;;  %v1340_v40 = vor.u32 1.1754944e-38, %v1339_v30  ;;  %2437 = vrcp.f32 %v3761_v62  ;;  %v4011_v20 = vld [vmem:[#allocation41_spill] sm:$0xff] }
 0x1c9   : > { %v1332_v8 = vadd.f32 %v2434_v38, %v1331_v0  ;;  %v1653_v32 = vpack.c.bf16 %v1627_v11, %v1625_v1  ;;  %vm1335_vm10 = vmor %vm1333_vm9, %vm1334_vm8  ;;  %v3768_v42 = vadd.f32 1.0, %v1526_v58  ;;  %v1560_v22 = vmul.f32 %v1559_v61, %v3524_v27 }
 0x1ca   : > { %v2436_v36 = vpop.eup %2435  ;;  %v1482_v49 = vmul.f32 %v1481_v3, %v3369_v52  ;;  %v3773_v41 = vmul.f32 0.5, %v4010_v10  ;;  %vm1338_vm11 = vcmp.eq.f32.partialorder %v1337_v21, 8.507059e+37  ;;  %v1397_v46 = vmul.f32 %v3508_v9, %v4011_v20 }
 0x1cb   : > { %v1336_v34 = vsel %vm1335_vm10, %v2434_v38, %v1332_v8  ;;  %v1409_v16 = vmul.f32 %v2436_v36, %v3746_v15  ;;  %1813 = vmatmul.bf16.gmra.mxu2 %v1653_v32  ;;  %v1417_v48 = vand.u32 2147483647, %v3746_v15  ;;  %2439 = vrcp.f32 %v3768_v42 }
 0x1cc   : > { %v1341_v6 = vsel %vm1338_vm11, %v1340_v40, %v1336_v34  ;;  %v1437_v39 = vmul.f32 %v1436_v56, %v3309_v44  ;;  %v3781_v54 = vadd.f32 0.18741608, %v1473_v4  ;;  %v1419_v43 = vand.u32 2147483648, %v3746_v15 }
 0x1cd   : > { %v1410_v28 = vsub.f32 1.0, %v1409_v16  ;;  %v3785_v13 = vmul.f32 %v1516_v35, %v3459_v18  ;;  %v1552_v45 = vadd.f32 0.05243302, %v1551_v57  ;;  %v1483_v24 = vadd.f32 0.112945676, %v1482_v49  ;;  %v4014_v16 = vld [vmem:[#allocation38_spill] sm:$0xff] }
 0x1ce   : > { %v1561_v12 = vadd.f32 0.014752088, %v1560_v22  ;;  %v2438_v9 = vpop.eup %2437  ;;  %v1342_v23 = vmul.f32 %v1341_v6, %v3422_v26  ;;  %vm1413_vm12 = vweird.f32 %v3746_v15  ;;  %vm1414_vm13 = vweird.f32 %v2436_v36 }
 0x1cf   : > { %v1411_v38 = vmul.f32 %v2436_v36, %v1410_v28  ;;  %vm3789_vm14 = vcmp.eq.f32.partialorder %v1417_v48, 8.507059e+37  ;;  %v1449_v4 = vmul.f32 %v2438_v9, %v3761_v62  ;;  %v1484_v31 = vmul.f32 %v1483_v24, %v3369_v52  ;;  %vm1415_vm15 = vmor %vm1413_vm12, %vm1414_vm13 }
 0x1d0   : > { %v1562_v18 = vmul.f32 %v1561_v12, %v3524_v27  ;;  %v1420_v55 = vor.u32 1.1754944e-38, %v1419_v43  ;;  %v1457_v56 = vand.u32 2147483647, %v3761_v62  ;;  %v1459_v26 = vand.u32 2147483648, %v3761_v62 }
 0x1d1   : > { %v1412_v37 = vadd.f32 %v2436_v36, %v1411_v38  ;;  %v2440_v57 = vpop.eup %2439  ;;  %v1450_v15 = vsub.f32 1.0, %v1449_v4  ;;  %vm1453_vm0 = vweird.f32 %v3761_v62  ;;  %v1485_v59 = vadd.f32 0.4994258, %v1484_v31  ;;  %v1794_v49 = vpop.f32.mrf.mxu2 }
 0x1d2   : > { %v1563_v33 = vadd.f32 0.112945676, %v1562_v18  ;;  %v2179_v25 = vclamps-f32 %v1342_v23, 1.0  ;;  %vm1454_vm1 = vweird.f32 %v2438_v9  ;;  %v1529_v53 = vmul.f32 %v2440_v57, %v3768_v42  ;;  %v4015_v18 = vld [vmem:[#allocation42_spill] sm:$0xff] }
 0x1d3   : > { %v1416_v63 = vsel %vm1415_vm15, %v2436_v36, %v1412_v37  ;;  %v1451_v30 = vmul.f32 %v2438_v9, %v1450_v15  ;;  %v1486_v17 = vmul.f32 %v1485_v59, %v3369_v52  ;;  %v1460_v21 = vor.u32 1.1754944e-38, %v1459_v26  ;;  %vm1455_vm2 = vmor %vm1453_vm0, %vm1454_vm1 }
 0x1d4   : > { %v1421_v7 = vsel %vm3789_vm14, %v1420_v55, %v1416_v63  ;;  %v1564_v50 = vmul.f32 %v1563_v33, %v3524_v27  ;;  %v1530_v14 = vsub.f32 1.0, %v1529_v53  ;;  %v1537_v61 = vand.u32 2147483647, %v3768_v42 }
 0x1d5   : > { %v1422_v29 = vmul.f32 %v1421_v7, %v1397_v46  ;;  %v1452_v0 = vadd.f32 %v2438_v9, %v1451_v30  ;;  %v1539_v58 = vand.u32 2147483648, %v3768_v42  ;;  %v3806_v35 = vadd.f32 1.0, %v1486_v17 }
 0x1d6   : > { %v1565_v60 = vadd.f32 0.4994258, %v1564_v50  ;;  %v1602_v11 = vadd.f32 1.0, %v2179_v25  ;;  %v1531_v3 = vmul.f32 %v2440_v57, %v1530_v14  ;;  %vm1534_vm3 = vweird.f32 %v2440_v57 }
 0x1d7   : > { %v2181_v1 = vclamps-f32 %v1422_v29, 1.0  ;;  %v1456_v8 = vsel %vm1455_vm2, %v2438_v9, %v1452_v0  ;;  %vm1458_vm4 = vcmp.eq.f32.partialorder %v1457_v56, 8.507059e+37  ;;  %vm1533_vm5 = vweird.f32 %v3768_v42 }
 0x1d8   : > { %2441 = vrcp.f32 %v3806_v35  ;;  %v1461_v36 = vsel %vm1458_vm4, %v1460_v21, %v1456_v8  ;;  %v1532_v32 = vadd.f32 %v2440_v57, %v1531_v3  ;;  %vm1538_vm6 = vcmp.eq.f32.partialorder %v1537_v61, 8.507059e+37  ;;  %v1833_v22 = vpop.f32.mrf.mxu3  ;;  %vm1535_vm7 = vmor %vm1533_vm5, %vm1534_vm3 }
 0x1d9   : > { %v1604_v40 = vadd.f32 1.0, %v2181_v1  ;;  %v1462_v10 = vmul.f32 %v1461_v36, %v1437_v39  ;;  %v1540_v34 = vor.u32 1.1754944e-38, %v1539_v58  ;;  %v1566_v62 = vmul.f32 %v1565_v60, %v3524_v27  ;;  %v3821_v39 = vld [vmem:[%s3906_s4] ss:$0 sm:$0xff] }
 0x1da   : > { %v1626_v20 = vmul.f32 %v1602_v11, %v4014_v16  ;;  %v1536_v6 = vsel %vm1535_vm7, %v2440_v57, %v1532_v32  ;;  %v1834_v42 = vadd.f32 %v1833_v22, %v1794_v49  ;;  %v1553_v48 = vmul.f32 %v1552_v45, %v3524_v27 }
 0x1db   : > { %v1628_v46 = vmul.f32 %v1604_v40, %v3773_v41  ;;  %v2182_v28 = vclamps-f32 %v1462_v10, 1.0  ;;  %v1541_v43 = vsel %vm1538_vm6, %v1540_v34, %v1536_v6  ;;  %v1567_v24 = vadd.f32 1.0, %v1566_v62 }
 0x1dc   : > { %v1542_v9 = vmul.f32 %v1541_v43, %v3785_v13  ;;  %v1475_v41 = vmul.f32 %v3781_v54, %v3369_v52  ;;  %v1554_v4 = vadd.f32 0.18741608, %v1553_v48  ;;  %v1906_v31 = vadd.f32 %v3821_v39, %v1834_v42  ;;  %v1796_v13 = vpop.f32.mrf.mxu2 }
 0x1dd   : > { %v1654_v12 = vpack.c.bf16 %v1628_v46, %v1626_v20  ;;  %2443 = vrcp.f32 %v1567_v24  ;;  %v1605_v44 = vadd.f32 1.0, %v2182_v28  ;;  %v597_v37 = vmul.f32 0.5, %v4015_v18 }
 0x1de   : > { %v2442_v23 = vpop.eup %2441  ;;  %v2184_v38 = vclamps-f32 %v1542_v9, 1.0  ;;  %v599_v55 = vmul.f32 0.5, %v3450_v2  ;;  %v1476_v15 = vadd.f32 1.1283791, %v1475_v41  ;;  %v1497_v52 = vand.u32 2147483647, %v3806_v35  ;;  %1918 = vst [vmem:[%s3832_s28] sm:$0xff] %v1906_v31 }
 0x1df   : > { %1852 = vmatmul.bf16.gmra.mxu3 %v1654_v12  ;;  %v1489_v45 = vmul.f32 %v2442_v23, %v3806_v35  ;;  %v1499_v54 = vand.u32 2147483648, %v3806_v35  ;;  %v1629_v33 = vmul.f32 %v1605_v44, %v597_v37  ;;  %vm1494_vm8 = vweird.f32 %v2442_v23 }
 0x1e0   : > { %v1607_v56 = vadd.f32 1.0, %v2184_v38  ;;  %v1835_v57 = vpop.f32.mrf.mxu3  ;;  %v1555_v2 = vmul.f32 %v1554_v4, %v3524_v27  ;;  %vm1493_vm9 = vweird.f32 %v3806_v35  ;;  %v1477_v21 = vmul.f32 %v1476_v15, %v3344_v51 }
 0x1e1   : > { %v1490_v26 = vsub.f32 1.0, %v1489_v45  ;;  %v1836_v59 = vadd.f32 %v1835_v57, %v1796_v13  ;;  %vm1495_vm10 = vmor %vm1493_vm9, %vm1494_vm8  ;;  %v1500_v50 = vor.u32 1.1754944e-38, %v1499_v54  ;;  %vm1498_vm11 = vcmp.eq.f32.partialorder %v1497_v52, 8.507059e+37 }
 0x1e2   : > { %v1631_v25 = vmul.f32 %v1607_v56, %v599_v55  ;;  %v1556_v0 = vadd.f32 1.1283791, %v1555_v2  ;;  %v1579_v60 = vand.u32 2147483648, %v1567_v24  ;;  %v1577_v11 = vand.u32 2147483647, %v1567_v24 }
 0x1e3   : > { %v1491_v63 = vmul.f32 %v2442_v23, %v1490_v26  ;;  %v2444_v53 = vpop.eup %2443  ;;  %v1907_v29 = vadd.f32 %v3821_v39, %v1836_v59  ;;  %vm1573_vm13 = vweird.f32 %v1567_v24  ;;  %v598_v10 = vmul.f32 0.5, %v3332_v5 }
 0x1e4   : > { %v1655_v7 = vpack.c.bf16 %v1631_v25, %v1629_v33  ;;  %v1569_v17 = vmul.f32 %v2444_v53, %v1567_v24  ;;  %vm1574_vm12 = vweird.f32 %v2444_v53  ;;  %v1580_v3 = vor.u32 1.1754944e-38, %v1579_v60 }
 0x1e5   : > { %v1492_v30 = vadd.f32 %v2442_v23, %v1491_v63  ;;  %1919 = vst [vmem:[%s3832_s28 + $0x8] sm:$0xff] %v1907_v29  ;;  %vm1575_vm14 = vmor %vm1573_vm13, %vm1574_vm12  ;;  %v1557_v8 = vmul.f32 %v1556_v0, %v3496_v47  ;;  %vm1578_vm15 = vcmp.eq.f32.partialorder %v1577_v11, 8.507059e+37  ;;  %v600_v34 = vmul.f32 0.5, %v3472_v19 }
 0x1e6   : > { %1818 = vmatmul.bf16.gmra.mxu2 %v1655_v7  ;;  %v1570_v61 = vsub.f32 1.0, %v1569_v17 }
 0x1e7   : > { %v1496_v14 = vsel %vm1495_vm10, %v2442_v23, %v1492_v30 }
 0x1e8   : > { %v1501_v58 = vsel %vm1498_vm11, %v1500_v50, %v1496_v14  ;;  %v1571_v1 = vmul.f32 %v2444_v53, %v1570_v61 }
 0x1e9   : > { %v1502_v27 = vmul.f32 %v1501_v58, %v1477_v21 }
 0x1ea   : > { %v1572_v35 = vadd.f32 %v2444_v53, %v1571_v1 }
 0x1eb   : > { %v2183_v40 = vclamps-f32 %v1502_v27, 1.0 }
 0x1ec   : > { %v1576_v51 = vsel %vm1575_vm14, %v2444_v53, %v1572_v35 }
 0x1ed   : > { %v1581_v36 = vsel %vm1578_vm15, %v1580_v3, %v1576_v51  ;;  %v1606_v22 = vadd.f32 1.0, %v2183_v40 }
 0x1ee   : > { %v1582_v32 = vmul.f32 %v1581_v36, %v1557_v8 }
 0x1ef   : > { %v1630_v16 = vmul.f32 %v1606_v22, %v598_v10 }
 0x1f0   : > { %v2185_v49 = vclamps-f32 %v1582_v32, 1.0 }
 0x1f2   : > { %v1608_v62 = vadd.f32 1.0, %v2185_v49 }
 0x1f4   : > { %v1632_v20 = vmul.f32 %v1608_v62, %v600_v34 }
 0x1f6   : > { %v1656_v46 = vpack.c.bf16 %v1632_v20, %v1630_v16 }
 0x1f8   : > { %1857 = vmatmul.bf16.gmra.mxu3 %v1656_v46  ;;  %v1799_v47 = vpop.f32.mrf.mxu2 }
 0x200   : > { %v1801_v28 = vpop.f32.mrf.mxu2 }
 0x208   : > { %v1838_v6 = vpop.f32.mrf.mxu3 }
 0x209   : > { %v1839_v42 = vadd.f32 %v1838_v6, %v1799_v47 }
 0x20b   : > { %v1908_v48 = vadd.f32 %v3821_v39, %v1839_v42 }
 0x20d   : > { %1920 = vst [vmem:[%s3832_s28 + $0x10] sm:$0xff] %v1908_v48 }
 0x210   : > { %v1840_v43 = vpop.f32.mrf.mxu3 }
 0x211   : > { %v1841_v24 = vadd.f32 %v1840_v43, %v1801_v28 }
 0x213   : > { %v1909_v5 = vadd.f32 %v3821_v39, %v1841_v24 }
 0x215   : > { %1921 = vst [vmem:[%s3832_s28 + $0x18] sm:$0xff] %v1909_v5 }
 0x217   : > { %v1804_v19 = vpop.f32.mrf.mxu2 }
 0x21f   : > { %v1806_v41 = vpop.f32.mrf.mxu2 }
 0x229   : > { %v1843_v12 = vpop.f32.mrf.mxu3 }
 0x22a   : > { %v1844_v9 = vadd.f32 %v1843_v12, %v1804_v19 }
 0x22c   : > { %v1910_v23 = vadd.f32 %v3821_v39, %v1844_v9 }
 0x22e   : > { %1922 = vst [vmem:[%s3832_s28 + $0x20] sm:$0xff] %v1910_v23 }
 0x231   : > { %v1845_v38 = vpop.f32.mrf.mxu3 }
 0x232   : > { %v1846_v44 = vadd.f32 %v1845_v38, %v1806_v41 }
 0x234   : > { %v1911_v45 = vadd.f32 %v3821_v39, %v1846_v44 }
 0x236   : > { %1923 = vst [vmem:[%s3832_s28 + $0x28] sm:$0xff] %v1911_v45 }
 0x23a   : > { %v1809_v4 = vpop.f32.mrf.mxu2 }
 0x242   : > { %v1811_v55 = vpop.f32.mrf.mxu2 }
 0x244   : > { %v1848_v31 = vpop.f32.mrf.mxu3 }
 0x245   : > { %v1849_v18 = vadd.f32 %v1848_v31, %v1809_v4 }
 0x247   : > { %v1912_v37 = vadd.f32 %v3821_v39, %v1849_v18 }
 0x249   : > { %1924 = vst [vmem:[%s3832_s28 + $0x30] sm:$0xff] %v1912_v37 }
 0x24c   : > { %v1850_v56 = vpop.f32.mrf.mxu3 }
 0x24d   : > { %v1851_v26 = vadd.f32 %v1850_v56, %v1811_v55 }
 0x24e   : > { %v1814_v57 = vpop.f32.mrf.mxu2 }
 0x24f   : > { %v1913_v13 = vadd.f32 %v3821_v39, %v1851_v26 }
 0x251   : > { %1925 = vst [vmem:[%s3832_s28 + $0x38] sm:$0xff] %v1913_v13 }
 0x256   : > { %v1816_v59 = vpop.f32.mrf.mxu2 }
 0x262   : > { %v1853_v15 = vpop.f32.mrf.mxu3 }
 0x263   : > { %v1854_v52 = vadd.f32 %v1853_v15, %v1814_v57 }
 0x265   : > { %v1914_v54 = vadd.f32 %v3821_v39, %v1854_v52 }
 0x267   : > { %1926 = vst [vmem:[%s3832_s28 + $0x40] sm:$0xff] %v1914_v54 }
 0x269   : > { %v1819_v53 = vpop.f32.mrf.mxu2 }
 0x26a   : > { %v1855_v33 = vpop.f32.mrf.mxu3 }
 0x26b   : > { %v1856_v25 = vadd.f32 %v1855_v33, %v1816_v59 }
 0x26d   : > { %v1915_v63 = vadd.f32 %v3821_v39, %v1856_v25 }
 0x26f   : > { %1927 = vst [vmem:[%s3832_s28 + $0x48] sm:$0xff] %v1915_v63 }
 0x271   : > { %v1821_v17 = vpop.f32.mrf.mxu2 }
 0x27b   : > { %v1858_v2 = vpop.f32.mrf.mxu3 }
 0x27c   : > { %v1859_v7 = vadd.f32 %v1858_v2, %v1819_v53 }
 0x27e   : > { %v1916_v30 = vadd.f32 %v3821_v39, %v1859_v7 }
 0x280   : > { %1928 = vst [vmem:[%s3832_s28 + $0x50] sm:$0xff] %v1916_v30 }
 0x283   : > { %v1860_v50 = vpop.f32.mrf.mxu3 }
 0x284   : > { %v1861_v29 = vadd.f32 %v1860_v50, %v1821_v17 }
 0x286   : > { %v1917_v21 = vadd.f32 %v3821_v39, %v1861_v29 }
 0x288   : > { %1929 = vst [vmem:[%s3832_s28 + $0x58] sm:$0xff] %v1917_v21 }
 0x289   : > { %2592 = shalt.err (!%p2589_p0)
}
 0x28a   : > { %s2664_s10 = smov 128   ;;  %s2665_s2 = smov 8  }
 0x28b   : > { %2310 = dma.vmem_to_hbm [thread:$0]  (%p2788_p3), %s1944_s30, 1536, %s1946_s6, %s1931_s27, %s2664_s10, %s2664_s10, %s2665_s2  }
 0x28c PF: > { %s1960_s26 = sand.u32 1, %s2635_s18   ;;  %p2327_p5 = pnand %p2068_p11, %p2745_p6 }
 0x28d   : > { %s1961_s28 = scalar_lea.sflag [#allocation4], %s1960_s26 }
 0x28e   : > { %p2328_p7 = pneg %p2327_p5 }
 0x290   : > { %2630 = dma.done.wait (%p2328_p7), %s1961_s28, 1536  }
 0x291   : > { %2632 = vsyncadd (%p2328_p7), %s1961_s28, 4294965760  ;;  %s23_s23 = sadd.s32 1, %s2655_s23   ;;  %s4016_s18 = smov %s2639_s19 }
 0x292   : > { %p20_p9 = scmp.ge.s32.totalorder %s23_s23, 4   ;;  %s4017_s19 = smov %s2643_s20 }
 0x293   : > { %s4018_s20 = smov %s2800_s25  ;;  %s4019_s21 = smov %s2651_s22 }
 0x294   : > { %s4020_s22 = smov %s4022_s15  ;;  %22 = sbr.rel (!%p20_p9) target bundleno = 11 (0xb), region = 108 }
 0x299   :  { %1967 = vsyncpa [#allocation3], 1 }
 0x29a   :  { %1969 = vsyncpa [#allocation3 + $0x1], 1 }
 0x29b   :  { %1970 = vsyncpa [#allocation6], 1 }
 0x29c   :  { %1971 = vsyncpa [#allocation9], 1 }
 0x29d   :  { %1972 = vsyncpa [#allocation4], 1 }
 0x29e   :  { %1974 = vsyncpa [#allocation4 + $0x1], 1 }

</bundles_post_ra>
